<compile_context>
chip_gen: v7x
topology: tpu7x:2x2x1
jax: 0.10.0
libtpu: 0.0.40
codegen_flags: <defaults>
</compile_context>

<pallas_src>
import functools

import jax
import jax.numpy as jnp
from jax import lax
from jax.experimental import pallas as pl
from jax.experimental.pallas import tpu as pltpu


def _aux_head_kernel(x_ref, w1_ref, b1_ref, w2_ref, b2_ref, wl_ref, bl_ref,
                     o_ref, *, pool_offsets, pool_k, batch):
    """Whole AuxiliaryHead forward for the full (tiny) batch; all refs in VMEM."""
    wdt = w1_ref.dtype                                      # f32 or bf16 (MXU path only)

    x = jnp.maximum(x_ref[...], 0.0)                        # ReLU, (N, H, W, C)

    # AvgPool2d(k=5, stride=input_size-5, pad=0) -> 2x2 spatial.  The /25 and
    # the BN1 scale are folded into w1, so only window SUMS are needed here.
    # Stack the 4 pooled positions along the sublane (row) axis -> one M=4N dot.
    rows = []
    for r in pool_offsets:                                  # static python ints
        for c in pool_offsets:
            rows.append(jnp.sum(x[:, r:r + pool_k, c:c + pool_k, :], axis=(1, 2)))
    pooled_all = jnp.concatenate(rows, axis=0)              # (4N, C), sublane stack

    # 1x1 conv (+ folded BN scale) as a single MXU push, then bias + ReLU.
    h_all = jnp.dot(pooled_all.astype(wdt), w1_ref[...],
                    preferred_element_type=jnp.float32)     # (4N, 128)
    h_all = jnp.maximum(h_all + b1_ref[...], 0.0)

    # Conv2d(128, 768, kernel=2) over the full 2x2 map == sum over positions of
    # (N,128)x(128,768) dots; 128-aligned static slices of w2, f32 accumulator.
    n_pos = len(pool_offsets) * len(pool_offsets)
    g = jnp.zeros((batch, w2_ref.shape[1]), jnp.float32)
    for p in range(n_pos):                                  # p in row-major (kh, kw)
        h_p = h_all[p * batch:(p + 1) * batch, :]           # (N, 128)
        g = g + jnp.dot(h_p.astype(wdt), w2_ref[p * 128:(p + 1) * 128, :],
                        preferred_element_type=jnp.float32)
    g = jnp.maximum(g + b2_ref[...], 0.0)                   # (N, 768)

    # Linear classifier, lane-dense (768 -> 128 zero-padded) output.
    logits = jnp.dot(g.astype(wl_ref.dtype), wl_ref[...],
                     preferred_element_type=jnp.float32) + bl_ref[...]
    o_ref[...] = logits.astype(o_ref.dtype)                 # (N, 128)


def auxiliary_head(x, params, *, input_size, num_classes, data_format="NCHW"):
    assert input_size in (7, 8)
    stride = input_size - 5
    n_out = (input_size - 5) // stride + 1                  # always 2
    pool_offsets = tuple(i * stride for i in range(n_out))

    if data_format == "NCHW":
        # Prefer an NHWC producer upstream so this standalone transpose is free.
        x = jnp.transpose(x, (0, 2, 3, 1))                  # NCHW -> NHWC (glue)

    n = x.shape[0]
    out_pad = params["bl"].shape[-1]                        # 128 (lane-dense)

    kernel = functools.partial(_aux_head_kernel,
                               pool_offsets=pool_offsets, pool_k=5, batch=n)
    operands = (x, params["w1"], params["b1"], params["w2"], params["b2"],
                params["wl"], params["bl"])
    out = pl.pallas_call(
        kernel,
        out_shape=jax.ShapeDtypeStruct((n, out_pad), jnp.float32),
        in_specs=[pl.BlockSpec(memory_space=pltpu.MemorySpace.VMEM)] * len(operands),
        out_specs=pl.BlockSpec(memory_space=pltpu.MemorySpace.VMEM),
    )(*operands)
    # TODO(synk): for large batches on v7x, add a grid over N with
    #   dimension_semantics=("parallel",) to split across the two TensorCores.
    return out[:, :num_classes]


def init_params(key, channels, num_classes):
    """Deterministic synthetic parameters in PyTorch-native layouts."""
    k = jax.random.split(key, 12)
    return {
        "conv1_w": jax.random.normal(k[0], (128, channels, 1, 1), jnp.float32) * 0.1,
        "bn1_gamma": 1.0 + 0.1 * jax.random.normal(k[1], (128,), jnp.float32),
        "bn1_beta": 0.1 * jax.random.normal(k[2], (128,), jnp.float32),
        "bn1_mean": 0.1 * jax.random.normal(k[3], (128,), jnp.float32),
        "bn1_var": jax.random.uniform(k[4], (128,), jnp.float32, minval=0.5, maxval=1.5),
        "conv2_w": jax.random.normal(k[5], (768, 128, 2, 2), jnp.float32) * 0.05,
        "bn2_gamma": 1.0 + 0.1 * jax.random.normal(k[6], (768,), jnp.float32),
        "bn2_beta": 0.1 * jax.random.normal(k[7], (768,), jnp.float32),
        "bn2_mean": 0.1 * jax.random.normal(k[8], (768,), jnp.float32),
        "bn2_var": jax.random.uniform(k[9], (768,), jnp.float32, minval=0.5, maxval=1.5),
        "fc_w": jax.random.normal(k[10], (num_classes, 768), jnp.float32) * 0.03,
        "fc_b": 0.01 * jax.random.normal(k[11], (num_classes,), jnp.float32),
    }


def fold_params(raw, num_classes, *, pool_k=5, eps=1e-5,
                weights_dtype=jnp.float32, out_pad=128):
    """Fold BN (running stats) + avg-pool 1/k^2 into the weights; pad classifier
    to a lane-dense (768, 128) matrix.  Use weights_dtype=jnp.bfloat16 on
    v6e/v7x to halve the w2 HBM DMA and hit the bf16 MXU."""
    c_in = raw["conv1_w"].shape[1]
    inv_area = 1.0 / float(pool_k * pool_k)

    s1 = raw["bn1_gamma"] / jnp.sqrt(raw["bn1_var"] + eps)                 # (128,)
    b1 = raw["bn1_beta"] - raw["bn1_mean"] * s1
    w1f = (raw["conv1_w"].reshape(128, c_in).T * inv_area) * s1[None, :]   # (C, 128)

    s2 = raw["bn2_gamma"] / jnp.sqrt(raw["bn2_var"] + eps)                 # (768,)
    b2 = raw["bn2_beta"] - raw["bn2_mean"] * s2
    # OIHW -> (kh, kw, in, out), scale folds on the output axis, flatten to (512, 768).
    w2f = (jnp.transpose(raw["conv2_w"], (2, 3, 1, 0)) * s2).reshape(2 * 2 * 128, 768)

    wl = jnp.zeros((768, out_pad), jnp.float32).at[:, :num_classes].set(raw["fc_w"].T)
    bl = jnp.zeros((1, out_pad), jnp.float32).at[:, :num_classes].set(raw["fc_b"])

    return {
        "w1": w1f.astype(weights_dtype), "b1": b1.reshape(1, 128),
        "w2": w2f.astype(weights_dtype), "b2": b2.reshape(1, 768),
        "wl": wl.astype(weights_dtype), "bl": bl,
    }


def reference(x_nchw, raw, *, input_size, eps=1e-5):
    """Pure-JAX reference (lax reduce_window / conv, unfolded BN)."""
    stride = input_size - 5
    x = jnp.maximum(x_nchw, 0.0)
    pooled = lax.reduce_window(x, 0.0, lax.add, (1, 1, 5, 5),
                               (1, 1, stride, stride), "VALID") / 25.0

    def bn(t, g_, b_, m_, v_):
        return ((t - m_[None, :, None, None])
                / jnp.sqrt(v_[None, :, None, None] + eps)
                * g_[None, :, None, None] + b_[None, :, None, None])

    h = lax.conv_general_dilated(pooled, raw["conv1_w"], (1, 1), "VALID",
                                 dimension_numbers=("NCHW", "OIHW", "NCHW"))
    h = jnp.maximum(bn(h, raw["bn1_gamma"], raw["bn1_beta"],
                       raw["bn1_mean"], raw["bn1_var"]), 0.0)
    g = lax.conv_general_dilated(h, raw["conv2_w"], (1, 1), "VALID",
                                 dimension_numbers=("NCHW", "OIHW", "NCHW"))
    g = jnp.maximum(bn(g, raw["bn2_gamma"], raw["bn2_beta"],
                       raw["bn2_mean"], raw["bn2_var"]), 0.0)
    g = g.reshape(g.shape[0], -1)                        # (N, 768), H=W=1
    return g @ raw["fc_w"].T + raw["fc_b"]


if __name__ == "__main__":
    N, C, INPUT_SIZE, NUM_CLASSES = 4, 16, 8, 10
    key = jax.random.PRNGKey(0)
    kx, kp = jax.random.split(key)
    x = jax.random.normal(kx, (N, C, INPUT_SIZE, INPUT_SIZE), jnp.float32)

    raw = init_params(kp, C, NUM_CLASSES)
    params = fold_params(raw, NUM_CLASSES)               # weights_dtype=jnp.bfloat16 on v6e/v7x

    out = auxiliary_head(x, params, input_size=INPUT_SIZE, num_classes=NUM_CLASSES)
    out = jax.block_until_ready(out)

    ref = reference(x, raw, input_size=INPUT_SIZE)
    assert out.shape == (N, NUM_CLASSES)
    assert jnp.allclose(out, ref, atol=1e-3, rtol=1e-3), \
        f"max abs err {jnp.max(jnp.abs(out - ref))}"
    print("KERNEL_OK")
</pallas_src>

<mosaic_0001>
module attributes {stable_mosaic.version = 11 : i64} {
  func.func @_aux_head_kernel(%arg0: memref<4x8x8x16xf32, #tpu.memory_space<vmem>>, %arg1: memref<16x128xf32, #tpu.memory_space<vmem>>, %arg2: memref<1x128xf32, #tpu.memory_space<vmem>>, %arg3: memref<512x768xf32, #tpu.memory_space<vmem>>, %arg4: memref<1x768xf32, #tpu.memory_space<vmem>>, %arg5: memref<768x128xf32, #tpu.memory_space<vmem>>, %arg6: memref<1x128xf32, #tpu.memory_space<vmem>>, %arg7: memref<4x128xf32, #tpu.memory_space<vmem>>) attributes {dimension_semantics = [], scalar_prefetch = 0 : i64, scratch_operands = 0 : i64, tpu.core_type = #tpu.core_type<tc>} {
    %c0 = arith.constant 0 : index
    %c0_0 = arith.constant 0 : index
    %c0_1 = arith.constant 0 : index
    %c0_2 = arith.constant 0 : index
    %0 = vector.load %arg0[%c0, %c0_0, %c0_1, %c0_2] : memref<4x8x8x16xf32, #tpu.memory_space<vmem>>, vector<4x8x8x16xf32>
    %cst = arith.constant 0.000000e+00 : f32
    %1 = vector.broadcast %cst : f32 to vector<4x8x8x16xf32>
    %2 = arith.maximumf %0, %1 : vector<4x8x8x16xf32>
    %3 = vector.extract_strided_slice %2 {offsets = [0, 0, 0, 0], sizes = [4, 5, 5, 16], strides = [1, 1, 1, 1]} : vector<4x8x8x16xf32> to vector<4x5x5x16xf32>
    %cst_3 = arith.constant dense<0.000000e+00> : vector<4x16xf32>
    %4 = vector.multi_reduction <add>, %3, %cst_3 [1, 2] : vector<4x5x5x16xf32> to vector<4x16xf32>
    %5 = vector.extract_strided_slice %2 {offsets = [0, 0, 3, 0], sizes = [4, 5, 5, 16], strides = [1, 1, 1, 1]} : vector<4x8x8x16xf32> to vector<4x5x5x16xf32>
    %cst_4 = arith.constant dense<0.000000e+00> : vector<4x16xf32>
    %6 = vector.multi_reduction <add>, %5, %cst_4 [1, 2] : vector<4x5x5x16xf32> to vector<4x16xf32>
    %7 = vector.extract_strided_slice %2 {offsets = [0, 3, 0, 0], sizes = [4, 5, 5, 16], strides = [1, 1, 1, 1]} : vector<4x8x8x16xf32> to vector<4x5x5x16xf32>
    %cst_5 = arith.constant dense<0.000000e+00> : vector<4x16xf32>
    %8 = vector.multi_reduction <add>, %7, %cst_5 [1, 2] : vector<4x5x5x16xf32> to vector<4x16xf32>
    %9 = vector.extract_strided_slice %2 {offsets = [0, 3, 3, 0], sizes = [4, 5, 5, 16], strides = [1, 1, 1, 1]} : vector<4x8x8x16xf32> to vector<4x5x5x16xf32>
    %cst_6 = arith.constant dense<0.000000e+00> : vector<4x16xf32>
    %10 = vector.multi_reduction <add>, %9, %cst_6 [1, 2] : vector<4x5x5x16xf32> to vector<4x16xf32>
    %11 = tpu.concatenate %4, %6, %8, %10 in 0 : vector<4x16xf32>, vector<4x16xf32>, vector<4x16xf32>, vector<4x16xf32> -> vector<16x16xf32>
    %c0_7 = arith.constant 0 : index
    %c0_8 = arith.constant 0 : index
    %12 = vector.load %arg1[%c0_7, %c0_8] : memref<16x128xf32, #tpu.memory_space<vmem>>, vector<16x128xf32>
    %cst_9 = arith.constant dense<0.000000e+00> : vector<16x128xf32>
    %13 = tpu.matmul %11, %12, %cst_9 {dimension_numbers = #tpu.dot_dimension_numbers<[1], [0], [0], [1], [0, 0, 1, 1], [], []>} : vector<16x16xf32>, vector<16x128xf32>, vector<16x128xf32> -> vector<16x128xf32>
    %c0_10 = arith.constant 0 : index
    %c0_11 = arith.constant 0 : index
    %14 = vector.load %arg2[%c0_10, %c0_11] : memref<1x128xf32, #tpu.memory_space<vmem>>, vector<1x128xf32>
    %15 = vector.broadcast %14 : vector<1x128xf32> to vector<16x128xf32>
    %16 = arith.addf %13, %15 : vector<16x128xf32>
    %cst_12 = arith.constant 0.000000e+00 : f32
    %17 = vector.broadcast %cst_12 : f32 to vector<16x128xf32>
    %18 = arith.maximumf %16, %17 : vector<16x128xf32>
    %cst_13 = arith.constant 0.000000e+00 : f32
    %19 = vector.broadcast %cst_13 : f32 to vector<4x768xf32>
    %20 = vector.extract_strided_slice %18 {offsets = [0, 0], sizes = [4, 128], strides = [1, 1]} : vector<16x128xf32> to vector<4x128xf32>
    %c0_14 = arith.constant 0 : index
    %c0_15 = arith.constant 0 : index
    %21 = vector.load %arg3[%c0_14, %c0_15] : memref<512x768xf32, #tpu.memory_space<vmem>>, vector<128x768xf32>
    %cst_16 = arith.constant dense<0.000000e+00> : vector<4x768xf32>
    %22 = tpu.matmul %20, %21, %cst_16 {dimension_numbers = #tpu.dot_dimension_numbers<[1], [0], [0], [1], [0, 0, 1, 1], [], []>} : vector<4x128xf32>, vector<128x768xf32>, vector<4x768xf32> -> vector<4x768xf32>
    %23 = arith.addf %19, %22 : vector<4x768xf32>
    %24 = vector.extract_strided_slice %18 {offsets = [4, 0], sizes = [4, 128], strides = [1, 1]} : vector<16x128xf32> to vector<4x128xf32>
    %c128 = arith.constant 128 : index
    %c0_17 = arith.constant 0 : index
    %25 = vector.load %arg3[%c128, %c0_17] : memref<512x768xf32, #tpu.memory_space<vmem>>, vector<128x768xf32>
    %cst_18 = arith.constant dense<0.000000e+00> : vector<4x768xf32>
    %26 = tpu.matmul %24, %25, %cst_18 {dimension_numbers = #tpu.dot_dimension_numbers<[1], [0], [0], [1], [0, 0, 1, 1], [], []>} : vector<4x128xf32>, vector<128x768xf32>, vector<4x768xf32> -> vector<4x768xf32>
    %27 = arith.addf %23, %26 : vector<4x768xf32>
    %28 = vector.extract_strided_slice %18 {offsets = [8, 0], sizes = [4, 128], strides = [1, 1]} : vector<16x128xf32> to vector<4x128xf32>
    %c256 = arith.constant 256 : index
    %c0_19 = arith.constant 0 : index
    %29 = vector.load %arg3[%c256, %c0_19] : memref<512x768xf32, #tpu.memory_space<vmem>>, vector<128x768xf32>
    %cst_20 = arith.constant dense<0.000000e+00> : vector<4x768xf32>
    %30 = tpu.matmul %28, %29, %cst_20 {dimension_numbers = #tpu.dot_dimension_numbers<[1], [0], [0], [1], [0, 0, 1, 1], [], []>} : vector<4x128xf32>, vector<128x768xf32>, vector<4x768xf32> -> vector<4x768xf32>
    %31 = arith.addf %27, %30 : vector<4x768xf32>
    %32 = vector.extract_strided_slice %18 {offsets = [12, 0], sizes = [4, 128], strides = [1, 1]} : vector<16x128xf32> to vector<4x128xf32>
    %c384 = arith.constant 384 : index
    %c0_21 = arith.constant 0 : index
    %33 = vector.load %arg3[%c384, %c0_21] : memref<512x768xf32, #tpu.memory_space<vmem>>, vector<128x768xf32>
    %cst_22 = arith.constant dense<0.000000e+00> : vector<4x768xf32>
    %34 = tpu.matmul %32, %33, %cst_22 {dimension_numbers = #tpu.dot_dimension_numbers<[1], [0], [0], [1], [0, 0, 1, 1], [], []>} : vector<4x128xf32>, vector<128x768xf32>, vector<4x768xf32> -> vector<4x768xf32>
    %35 = arith.addf %31, %34 : vector<4x768xf32>
    %c0_23 = arith.constant 0 : index
    %c0_24 = arith.constant 0 : index
    %36 = vector.load %arg4[%c0_23, %c0_24] : memref<1x768xf32, #tpu.memory_space<vmem>>, vector<1x768xf32>
    %37 = vector.broadcast %36 : vector<1x768xf32> to vector<4x768xf32>
    %38 = arith.addf %35, %37 : vector<4x768xf32>
    %cst_25 = arith.constant 0.000000e+00 : f32
    %39 = vector.broadcast %cst_25 : f32 to vector<4x768xf32>
    %40 = arith.maximumf %38, %39 : vector<4x768xf32>
    %c0_26 = arith.constant 0 : index
    %c0_27 = arith.constant 0 : index
    %41 = vector.load %arg5[%c0_26, %c0_27] : memref<768x128xf32, #tpu.memory_space<vmem>>, vector<768x128xf32>
    %cst_28 = arith.constant dense<0.000000e+00> : vector<4x128xf32>
    %42 = tpu.matmul %40, %41, %cst_28 {dimension_numbers = #tpu.dot_dimension_numbers<[1], [0], [0], [1], [0, 0, 1, 1], [], []>} : vector<4x768xf32>, vector<768x128xf32>, vector<4x128xf32> -> vector<4x128xf32>
    %c0_29 = arith.constant 0 : index
    %c0_30 = arith.constant 0 : index
    %43 = vector.load %arg6[%c0_29, %c0_30] : memref<1x128xf32, #tpu.memory_space<vmem>>, vector<1x128xf32>
    %44 = vector.broadcast %43 : vector<1x128xf32> to vector<4x128xf32>
    %45 = arith.addf %42, %44 : vector<4x128xf32>
    %c0_31 = arith.constant 0 : index
    %c0_32 = arith.constant 0 : index
    %46 = vector.load %arg7[%c0_31, %c0_32] : memref<4x128xf32, #tpu.memory_space<vmem>>, vector<4x128xf32>
    tpu.vector_store %arg7[%c0_31, %c0_32], %45 {strides = array<i32>} : memref<4x128xf32, #tpu.memory_space<vmem>>, vector<4x128xf32>,
    return
  }
}

</mosaic_0001>

<bundles_post_ra>
// kernel: tpu_custom_call.1
= control target key start
LH: loop header
LB: loop body
LE: loop exit
PB: predicated region body
PF: predicated region fallthrough
CT: control target
= control target key end

     0   :  { %12 = vsyncpa [#allocation3], 0  ;;  %s3627_s0 = inlined_call_operand.hbm [shape: f32[4,8,8,16], index: 0, kind: input, shape index: {}]   ;;  %s3628_s1 = inlined_call_operand.hbm [shape: f32[16,128], index: 1, kind: input, shape index: {}]   ;;  %s3629_s2 = inlined_call_operand.hbm [shape: f32[1,128], index: 2, kind: input, shape index: {}]   ;;  %s3630_s3 = inlined_call_operand.hbm [shape: f32[512,768], index: 3, kind: input, shape index: {}]   ;;  %s3631_s4 = inlined_call_operand.hbm [shape: f32[1,768], index: 4, kind: input, shape index: {}]   ;;  %s3632_s5 = inlined_call_operand.hbm [shape: f32[768,128], index: 5, kind: input, shape index: {}]   ;;  %s3633_s6 = inlined_call_operand.hbm [shape: f32[1,128], index: 6, kind: input, shape index: {}]   ;;  %s3634_s7 = inlined_call_operand.hbm [shape: f32[4,128], index: 7, kind: output, shape index: {}]  }
   0x1   :  { %13 = vsyncpa [#allocation6], 0 }
   0x2   :  { %14 = vsyncpa [#allocation9], 0 }
   0x3   :  { %15 = vsyncpa [#allocation12], 0 }
   0x4   :  { %16 = vsyncpa [#allocation4], 0  ;;  %s3086_s24 = smov [#allocation5]   ;;  %s3087_s26 = smov [#allocation8]  }
   0x5   :  { %s34_s25 = sshll.u32 %s3086_s24, 4  ;;  %s56_s27 = sshll.u32 %s3087_s26, 4  ;;  %s35_s25 = int_to_ptr.vmem [resolvable:$true] %s34_s25  ;;  %s3139_s27 = int_to_ptr.vmem [resolvable:$true] %s56_s27 }
   0x6   :  { %s2900_s30 = scalar_lea.hbm %s3628_s1, 256 }
   0x7   :  { %p2901_p0 = scmp.ne.s32.totalorder %s3628_s1, %s2900_s30  ;;  %p2904_p1 = scmp.lt.u32.totalorder %s2900_s30, %s3628_s1 }
   0x9   :  { %p2906_p2 = pnand %p2904_p1, %p2901_p0 }
   0xb   :  { %2909 = shalt.err (!%p2906_p2)
}
   0xc   :  { %s2910_s12 = scalar_lea.vmem %s35_s25, 256  ;;  %p2915_p4 = scmp.lt.s32.totalorder %s35_s25, %s35_s25 }
   0xd   :  { %p2911_p3 = scmp.ne.s32.totalorder %s35_s25, %s2910_s12  ;;  %p2916_p5 = scmp.lt.s32.totalorder %s2910_s12, %s2910_s12 }
   0xf   :  { %p2917_p6 = por %p2916_p5, %p2915_p4 }
  0x11   :  { %p2918_p7 = pnand %p2917_p6, %p2911_p3 }
  0x13   :  { %2921 = shalt.err (!%p2918_p7)
}
  0x14   :  { %s3088_s13 = smov 128   ;;  %s3089_s14 = smov 8  }
  0x15   :  { %40 = dma.hbm_to_vmem [thread:$0]  %s3628_s1, 256, %s35_s25, [#allocation6], %s3088_s13, %s3088_s13, %s3089_s14  }
  0x16   :  { %s2922_s19 = scalar_lea.hbm %s3630_s3, 49152 }
  0x17   :  { %p2923_p8 = scmp.ne.s32.totalorder %s3630_s3, %s2922_s19  ;;  %p2926_p9 = scmp.lt.u32.totalorder %s2922_s19, %s3630_s3 }
  0x19   :  { %p2928_p10 = pnand %p2926_p9, %p2923_p8 }
  0x1b   :  { %2931 = shalt.err (!%p2928_p10)
}
  0x1c   :  { %s2932_s24 = scalar_lea.vmem %s3139_s27, 49152  ;;  %p2937_p12 = scmp.lt.s32.totalorder %s3139_s27, %s3139_s27 }
  0x1d   :  { %p2933_p11 = scmp.ne.s32.totalorder %s3139_s27, %s2932_s24  ;;  %p2938_p13 = scmp.lt.s32.totalorder %s2932_s24, %s2932_s24 }
  0x1f   :  { %p2939_p0 = por %p2938_p13, %p2937_p12 }
  0x21   :  { %p2940_p1 = pnand %p2939_p0, %p2933_p11 }
  0x23   :  { %2943 = shalt.err (!%p2940_p1)
}
  0x24   :  { %s3090_s1 = smov 768   ;;  %s3091_s25 = smov 48  }
  0x25   :  { %62 = dma.hbm_to_vmem [thread:$0]  %s3630_s3, 49152, %s3139_s27, [#allocation9], %s3090_s1, %s3090_s1, %s3091_s25  }
  0x26   :  { %s3092_s29 = smov [#allocation11]   ;;  %s3093_s8 = smov [#allocation2]  }
  0x27   :  { %s78_s30 = sshll.u32 %s3092_s29, 4  ;;  %s22_s9 = sshll.u32 %s3093_s8, 4  ;;  %s79_s30 = int_to_ptr.vmem [resolvable:$true] %s78_s30  ;;  %s3173_s9 = int_to_ptr.vmem [resolvable:$true] %s22_s9 }
  0x28   :  { %s2944_s12 = scalar_lea.hbm %s3632_s5, 12288 }
  0x29   :  { %p2945_p2 = scmp.ne.s32.totalorder %s3632_s5, %s2944_s12  ;;  %p2948_p3 = scmp.lt.u32.totalorder %s2944_s12, %s3632_s5 }
  0x2b   :  { %p2950_p4 = pnand %p2948_p3, %p2945_p2 }
  0x2d   :  { %2953 = shalt.err (!%p2950_p4)
}
  0x2e   :  { %s2954_s3 = scalar_lea.vmem %s79_s30, 12288  ;;  %p2959_p6 = scmp.lt.s32.totalorder %s79_s30, %s79_s30 }
  0x2f   :  { %p2955_p5 = scmp.ne.s32.totalorder %s79_s30, %s2954_s3  ;;  %p2960_p7 = scmp.lt.s32.totalorder %s2954_s3, %s2954_s3 }
  0x31   :  { %p2961_p8 = por %p2960_p7, %p2959_p6 }
  0x33   :  { %p2962_p9 = pnand %p2961_p8, %p2955_p5 }
  0x35   :  { %2965 = shalt.err (!%p2962_p9)
}
  0x36   :  { %84 = dma.hbm_to_vmem [thread:$0]  %s3632_s5, 12288, %s79_s30, [#allocation12], %s3088_s13, %s3088_s13, %s3089_s14  }
  0x37   :  { %s2966_s22 = scalar_lea.hbm %s3627_s0, 4096 }
  0x38   :  { %p2967_p10 = scmp.ne.s32.totalorder %s3627_s0, %s2966_s22  ;;  %p2970_p11 = scmp.lt.u32.totalorder %s2966_s22, %s3627_s0 }
  0x3a   :  { %p2972_p12 = pnand %p2970_p11, %p2967_p10 }
  0x3c   :  { %2975 = shalt.err (!%p2972_p12)
}
  0x3d   :  { %s2976_s26 = scalar_lea.vmem %s3173_s9, 4096  ;;  %p2981_p0 = scmp.lt.s32.totalorder %s3173_s9, %s3173_s9 }
  0x3e   :  { %p2977_p13 = scmp.ne.s32.totalorder %s3173_s9, %s2976_s26  ;;  %p2982_p1 = scmp.lt.s32.totalorder %s2976_s26, %s2976_s26 }
  0x40   :  { %p2983_p2 = por %p2982_p1, %p2981_p0 }
  0x42   :  { %p2984_p3 = pnand %p2983_p2, %p2977_p13 }
  0x44   :  { %2987 = shalt.err (!%p2984_p3)
}
  0x45   :  { %28 = dma.hbm_to_vmem [thread:$0]  %s3627_s0, 4096, %s3173_s9, [#allocation3], %s3088_s13, %s3088_s13, %s3089_s14  }
  0x46   :  { %s3094_s29 = smov [#allocation7]   ;;  %s3095_s8 = smov [#allocation10]  }
  0x47   :  { %s47_s30 = sshll.u32 %s3094_s29, 4  ;;  %s69_s10 = sshll.u32 %s3095_s8, 4  ;;  %s48_s30 = int_to_ptr.vmem [resolvable:$true] %s47_s30  ;;  %s70_s10 = int_to_ptr.vmem [resolvable:$true] %s69_s10 }
  0x48   :  { %s2988_s15 = scalar_lea.hbm %s3629_s2, 16 }
  0x49   :  { %p2989_p4 = scmp.ne.s32.totalorder %s3629_s2, %s2988_s15  ;;  %p2992_p5 = scmp.lt.u32.totalorder %s2988_s15, %s3629_s2 }
  0x4b   :  { %p2994_p6 = pnand %p2992_p5, %p2989_p4 }
  0x4d   :  { %2997 = shalt.err (!%p2994_p6)
}
  0x4e   :  { %s2998_s0 = scalar_lea.vmem %s48_s30, 16  ;;  %s3002_s13 = scalar_lea.vmem %s48_s30, 32 }
  0x4f   :  { %p2999_p7 = scmp.ne.s32.totalorder %s48_s30, %s2998_s0  ;;  %p3003_p8 = scmp.lt.s32.totalorder %s48_s30, %s48_s30 }
  0x50   :  { %p3004_p9 = scmp.lt.s32.totalorder %s3002_s13, %s2998_s0 }
  0x52   :  { %p3005_p10 = por %p3004_p9, %p3003_p8 }
  0x54   :  { %p3006_p11 = pnand %p3005_p10, %p2999_p7 }
  0x56   :  { %3009 = shalt.err (!%p3006_p11)
}
  0x57   :  { %50 = dma.hbm_to_vmem [thread:$0]  %s3629_s2, 16, %s48_s30, [#allocation6]  }
  0x58   :  { %s3010_s20 = scalar_lea.hbm %s3631_s4, 96 }
  0x59   :  { %p3011_p12 = scmp.ne.s32.totalorder %s3631_s4, %s3010_s20  ;;  %p3014_p13 = scmp.lt.u32.totalorder %s3010_s20, %s3631_s4 }
  0x5b   :  { %p3016_p0 = pnand %p3014_p13, %p3011_p12 }
  0x5d   :  { %3019 = shalt.err (!%p3016_p0)
}
  0x5e   :  { %s3020_s1 = scalar_lea.vmem %s70_s10, 96  ;;  %p3025_p2 = scmp.lt.s32.totalorder %s70_s10, %s70_s10 }
  0x5f   :  { %p3021_p1 = scmp.ne.s32.totalorder %s70_s10, %s3020_s1  ;;  %p3026_p3 = scmp.lt.s32.totalorder %s3020_s1, %s3020_s1 }
  0x61   :  { %p3027_p4 = por %p3026_p3, %p3025_p2 }
  0x63   :  { %p3028_p5 = pnand %p3027_p4, %p3021_p1 }
  0x65   :  { %3031 = shalt.err (!%p3028_p5)
}
  0x66   :  { %72 = dma.hbm_to_vmem [thread:$0]  %s3631_s4, 96, %s70_s10, [#allocation9]  }
  0x67   :  { %s3096_s26 = smov [#allocation13]   ;;  %s3032_s30 = scalar_lea.hbm %s3633_s6, 16 }
  0x68   :  { %s91_s5 = sshll.u32 %s3096_s26, 4  ;;  %p3033_p6 = scmp.ne.s32.totalorder %s3633_s6, %s3032_s30  ;;  %s92_s5 = int_to_ptr.vmem [resolvable:$true] %s91_s5 }
  0x69   :  { %p3036_p7 = scmp.lt.u32.totalorder %s3032_s30, %s3633_s6 }
  0x6b   :  { %p3038_p8 = pnand %p3036_p7, %p3033_p6 }
  0x6d   :  { %3041 = shalt.err (!%p3038_p8)
}
  0x6e   :  { %s3042_s16 = scalar_lea.vmem %s92_s5, 16  ;;  %s3046_s4 = scalar_lea.vmem %s92_s5, 32 }
  0x6f   :  { %p3043_p9 = scmp.ne.s32.totalorder %s92_s5, %s3042_s16  ;;  %p3047_p10 = scmp.lt.s32.totalorder %s92_s5, %s92_s5 }
  0x70   :  { %p3048_p11 = scmp.lt.s32.totalorder %s3046_s4, %s3042_s16 }
  0x72   :  { %p3049_p12 = por %p3048_p11, %p3047_p10 }
  0x74   :  { %p3050_p13 = pnand %p3049_p12, %p3043_p9 }
  0x76   :  { %3053 = shalt.err (!%p3050_p13)
}
  0x77   :  { %94 = dma.hbm_to_vmem [thread:$0]  %s3633_s6, 16, %s92_s5, [#allocation12]  }
  0x78   :  { %3076 = dma.done.wait [#allocation3], 4096  }
  0x79   :  { %3077 = vsyncadd [#allocation3], 4294963200 }
  0x7a   :  { %3078 = dma.done.wait [#allocation6], 272  }
  0x7b   :  { %3079 = vsyncadd [#allocation6], 4294967024 }
  0x7c   :  { %3080 = dma.done.wait [#allocation9], 49248  }
  0x7d   :  { %3081 = vsyncadd [#allocation9], 4294918048 }
  0x7e   :  { %3082 = dma.done.wait [#allocation12], 12304  }
  0x7f   :  { %3083 = vsyncadd [#allocation12], 4294954992  ;;  %v542_v0 = vld [vmem:[#allocation5] sm:$0xff]  ;;  %v543_v1 = vld [vmem:[#allocation5 + $0x8] sm:$0xff]  ;;  %vm180_vm0 = vcmask 126976   ;;  %vm505_vm1 = vcmask 1041409  }
  0x80   :  { %v3246_v2 = vld [vmem:[#allocation2] sm:$0xff]  ;;  %v2385_v3 = vpack.c.bf16 %v543_v1, %v542_v0  ;;  %v3248_v4 = vld [vmem:[#allocation2 + $0x8] sm:$0xff]  ;;  %v3250_v5 = vld [vmem:[#allocation2 + $0x10] sm:$0xff]  ;;  %vm507_vm2 = vcmask 1042434   ;;  %vm516_vm3 = vcmask 1045509   ;;  %vm509_vm4 = vcmask 1043459  }
  0x81   :  { %v3252_v6 = vld [vmem:[#allocation2 + $0x18] sm:$0xff]  ;;  %v3254_v7 = vld [vmem:[#allocation2 + $0x20] sm:$0xff]  ;;  %v3256_v8 = vld [vmem:[#allocation2 + $0x28] sm:$0xff]  ;;  %v148_v10 = vmax.f32 %v3246_v2, 0.0  ;;  %v149_v14 = vmax.f32 %v3248_v4, 0.0  ;;  %v150_v15 = vmax.f32 %v3250_v5, 0.0 }
  0x82   :  { %v3258_v9 = vld [vmem:[#allocation2 + $0x40] sm:$0xff]  ;;  %2386 = vmatprep.subr.bf16.mxu0 %v2385_v3  ;;  %v3261_v11 = vld [vmem:[#allocation2 + $0x48] sm:$0xff]  ;;  %v3263_v12 = vld [vmem:[#allocation2 + $0x50] sm:$0xff]  ;;  %v151_v16 = vmax.f32 %v3252_v6, 0.0  ;;  %v152_v20 = vmax.f32 %v3254_v7, 0.0  ;;  %vm518_vm5 = vcmask 1046534  }
  0x83   :  { %v3265_v13 = vld [vmem:[#allocation2 + $0x58] sm:$0xff]  ;;  %2388 = vmatpush3.bf16.msra.mxu0 %v2385_v3  ;;  %v3270_v17 = vld [vmem:[#allocation2 + $0x60] sm:$0xff]  ;;  %v3272_v18 = vld [vmem:[#allocation2 + $0x68] sm:$0xff]  ;;  %v156_v22 = vmax.f32 %v3258_v9, 0.0  ;;  %v157_v26 = vmax.f32 %v3261_v11, 0.0  ;;  %v158_v27 = vmax.f32 %v3263_v12, 0.0 }
  0x84   :  { %v3274_v19 = vld [vmem:[#allocation2 + $0x80] sm:$0xff]  ;;  %v3279_v23 = vld [vmem:[#allocation2 + $0x88] sm:$0xff]  ;;  %v3281_v24 = vld [vmem:[#allocation2 + $0x90] sm:$0xff]  ;;  %v159_v28 = vmax.f32 %v3265_v13, 0.0  ;;  %v160_v32 = vmax.f32 %v3270_v17, 0.0  ;;  %v181_v46 = vsel %vm180_vm0, %v148_v10, 0.0 }
  0x85   :  { %v3283_v25 = vld [vmem:[#allocation2 + $0x98] sm:$0xff]  ;;  %v3288_v29 = vld [vmem:[#allocation2 + $0xa0] sm:$0xff]  ;;  %v3290_v30 = vld [vmem:[#allocation2 + $0xa8] sm:$0xff]  ;;  %v164_v34 = vmax.f32 %v3274_v19, 0.0  ;;  %v165_v38 = vmax.f32 %v3279_v23, 0.0  ;;  %v166_v39 = vmax.f32 %v3281_v24, 0.0 }
  0x86   :  { %v3292_v31 = vld [vmem:[#allocation2 + $0xc0] sm:$0xff]  ;;  %v3297_v35 = vld [vmem:[#allocation2 + $0xc8] sm:$0xff]  ;;  %v3299_v36 = vld [vmem:[#allocation2 + $0xd0] sm:$0xff]  ;;  %v167_v40 = vmax.f32 %v3283_v25, 0.0  ;;  %v168_v43 = vmax.f32 %v3288_v29, 0.0  ;;  %v182_v49 = vsel %vm180_vm0, %v149_v14, 0.0 }
  0x87   :  { %v3301_v37 = vld [vmem:[#allocation2 + $0xd8] sm:$0xff]  ;;  %v3306_v41 = vld [vmem:[#allocation2 + $0xe0] sm:$0xff]  ;;  %v3308_v42 = vld [vmem:[#allocation2 + $0xe8] sm:$0xff]  ;;  %v172_v45 = vmax.f32 %v3292_v31, 0.0  ;;  %v173_v47 = vmax.f32 %v3297_v35, 0.0  ;;  %v174_v48 = vmax.f32 %v3299_v36, 0.0  ;;  %v183_v53 = vadd.f32 %v182_v49, %v181_v46 }
  0x88   :  { %v184_v50 = vsel %vm180_vm0, %v150_v15, 0.0  ;;  %v3636_v51 = vmax.f32 %v3301_v37, 0.0  ;;  %v3635_v52 = vmax.f32 %v3306_v41, 0.0  ;;  %v196_v54 = vsel %vm180_vm0, %v156_v22, 0.0  ;;  %s3098_s6 = smov [#allocation14]  }
  0x89   :  { %v3333_v56 = vsel %vm180_vm0, %v151_v16, 0.0  ;;  %v197_v57 = vsel %vm180_vm0, %v157_v26, 0.0  ;;  %v199_v58 = vsel %vm180_vm0, %v158_v27, 0.0  ;;  %v185_v59 = vadd.f32 %v184_v50, %v183_v53  ;;  %s2253_s18 = sshll.u32 %s3098_s6, 4  ;;  %s2254_s18 = int_to_ptr.vmem [resolvable:$true] %s2253_s18 }
  0x8a   :  { %v198_v60 = vadd.f32 %v197_v57, %v196_v54  ;;  %v211_v61 = vsel %vm180_vm0, %v164_v34, 0.0  ;;  %v212_v62 = vsel %vm180_vm0, %v165_v38, 0.0  ;;  %v3350_v63 = vsel %vm180_vm0, %v152_v20, 0.0  ;;  %s3054_s3 = scalar_lea.vmem %s2254_s18, 64  ;;  %p3059_p1 = scmp.lt.s32.totalorder %s2254_s18, %s2254_s18 }
  0x8b   :  { %v3355_v0 = vsel %vm180_vm0, %v159_v28, 0.0  ;;  %v213_v1 = vadd.f32 %v212_v62, %v211_v61  ;;  %v214_v3 = vsel %vm180_vm0, %v166_v39, 0.0  ;;  %v187_v46 = vadd.f32 %v3333_v56, %v185_v59  ;;  %p3055_p0 = scmp.ne.s32.totalorder %s2254_s18, %s3054_s3  ;;  %p3060_p2 = scmp.lt.s32.totalorder %s3054_s3, %s3054_s3 }
  0x8c   :  { %v200_v49 = vadd.f32 %v199_v58, %v198_v60  ;;  %v226_v50 = vsel %vm180_vm0, %v172_v45, 0.0  ;;  %v227_v53 = vsel %vm180_vm0, %v173_v47, 0.0  ;;  %v3370_v54 = vsel %vm180_vm0, %v160_v32, 0.0 }
  0x8d   :  { %v215_v57 = vadd.f32 %v214_v3, %v213_v1  ;;  %v228_v61 = vadd.f32 %v227_v53, %v226_v50  ;;  %v229_v59 = vsel %vm180_vm0, %v174_v48, 0.0  ;;  %v189_v58 = vadd.f32 %v3350_v63, %v187_v46  ;;  %p3061_p3 = por %p3060_p2, %p3059_p1 }
  0x8e   :  { %v202_v60 = vadd.f32 %v3355_v0, %v200_v49  ;;  %v3380_v62 = vsel %vm180_vm0, %v167_v40, 0.0  ;;  %v3385_v55 = vsel %vm180_vm0, %v168_v43, 0.0  ;;  %v3391_v50 = vsel %vm180_vm0, %v3636_v51, 0.0 }
  0x8f   :  { %v217_v1 = vadd.f32 %v3380_v62, %v215_v57  ;;  %v230_v3 = vadd.f32 %v229_v59, %v228_v61  ;;  %v3396_v46 = vsel %vm180_vm0, %v3635_v52, 0.0  ;;  %v190_v49 = vrot.slane %v189_v58, 4  ;;  %p3062_p4 = pnand %p3061_p3, %p3055_p0 }
  0x90   :  { %v204_v53 = vadd.f32 %v3370_v54, %v202_v60  ;;  %v261_v44 = vrot.slane %v148_v10, 3  ;;  %v262_v57 = vrot.slane %v149_v14, 3  ;;  %v263_v33 = vrot.slane %v150_v15, 3 }
  0x91   :  { %v219_v61 = vadd.f32 %v3385_v55, %v217_v1  ;;  %v232_v59 = vadd.f32 %v3391_v50, %v230_v3  ;;  %v264_v21 = vrot.slane %v151_v16, 3  ;;  %v191_v52 = vadd.f32 %v190_v49, %v189_v58 }
  0x92   :  { %v205_v51 = vrot.slane %v204_v53, 4  ;;  %v265_v60 = vrot.slane %v152_v20, 3  ;;  %v266_v2 = vrot.slane %v156_v22, 3  ;;  %v267_v14 = vrot.slane %v157_v26, 3 }
  0x93   :  { %v220_v4 = vrot.slane %v219_v61, 4  ;;  %v234_v10 = vadd.f32 %v3396_v46, %v232_v59  ;;  %v268_v5 = vrot.slane %v158_v27, 3  ;;  %v192_v15 = vrot.slane %v191_v52, 2 }
  0x94   :  { %v206_v6 = vadd.f32 %v205_v51, %v204_v53  ;;  %v269_v16 = vrot.slane %v159_v28, 3  ;;  %v270_v7 = vrot.slane %v160_v32, 3  ;;  %v271_v22 = vrot.slane %v164_v34, 3 }
  0x95   :  { %v221_v20 = vadd.f32 %v220_v4, %v219_v61  ;;  %v235_v9 = vrot.slane %v234_v10, 4  ;;  %v272_v11 = vrot.slane %v165_v38, 3  ;;  %v193_v26 = vadd.f32 %v192_v15, %v191_v52 }
  0x96   :  { %v207_v58 = vrot.slane %v206_v6, 2  ;;  %v273_v12 = vrot.slane %v166_v39, 3  ;;  %v274_v13 = vrot.slane %v167_v40, 3  ;;  %v275_v17 = vrot.slane %v168_v43, 3 }
  0x97   :  { %v222_v27 = vrot.slane %v221_v20, 2  ;;  %v236_v28 = vadd.f32 %v235_v9, %v234_v10  ;;  %v276_v19 = vrot.slane %v172_v45, 3  ;;  %v194_v32 = vrot.slane %v193_v26, 1 }
  0x98   :  { %v208_v34 = vadd.f32 %v207_v58, %v206_v6  ;;  %v277_v23 = vrot.slane %v173_v47, 3  ;;  %v301_v38 = vsel %vm180_vm0, %v261_v44, 0.0  ;;  %v302_v25 = vsel %vm180_vm0, %v262_v57, 0.0 }
  0x99   :  { %v223_v24 = vadd.f32 %v222_v27, %v221_v20  ;;  %v237_v39 = vrot.slane %v236_v28, 2  ;;  %v304_v40 = vsel %vm180_vm0, %v263_v33, 0.0  ;;  %v278_v29 = vrot.slane %v174_v48, 3 }
  0x9a   :  { %v209_v51 = vrot.slane %v208_v34, 1  ;;  %v3637_v31 = vmax.f32 %v3301_v37, 0.0  ;;  %v303_v45 = vadd.f32 %v302_v25, %v301_v38  ;;  %v3638_v35 = vmax.f32 %v3306_v41, 0.0 }
  0x9b   :  { %v224_v52 = vrot.slane %v223_v24, 1  ;;  %v238_v1 = vadd.f32 %v237_v39, %v236_v28  ;;  %v316_v44 = vsel %vm180_vm0, %v266_v2, 0.0  ;;  %v3446_v3 = vadd.f32 %v194_v32, %v193_v26 }
  0x9c   :  { %v279_v43 = vrot.slane %v3637_v31, 3  ;;  %v280_v47 = vrot.slane %v3638_v35, 3  ;;  %v305_v49 = vadd.f32 %v304_v40, %v303_v45  ;;  %v317_v33 = vsel %vm180_vm0, %v267_v14, 0.0 }
  0x9d   :  { %v319_v53 = vsel %vm180_vm0, %v268_v5, 0.0  ;;  %v3450_v36 = vadd.f32 %v209_v51, %v208_v34  ;;  %v306_v37 = vsel %vm180_vm0, %v264_v21, 0.0  ;;  %v308_v48 = vsel %vm180_vm0, %v265_v60, 0.0 }
  0x9e   :  { %v318_v57 = vadd.f32 %v317_v33, %v316_v44  ;;  %v3454_v61 = vadd.f32 %v224_v52, %v223_v24  ;;  %v307_v41 = vadd.f32 %v306_v37, %v305_v49  ;;  %v331_v59 = vsel %vm180_vm0, %v271_v22, 0.0 }
  0x9f   :  { %v332_v2 = vsel %vm180_vm0, %v272_v11, 0.0  ;;  %v239_v4 = vrot.slane %v238_v1, 1  ;;  %v334_v14 = vsel %vm180_vm0, %v273_v12, 0.0  ;;  %v321_v6 = vsel %vm180_vm0, %v269_v16, 0.0 }
  0xa0   :  { %v320_v10 = vadd.f32 %v319_v53, %v318_v57  ;;  %v333_v15 = vadd.f32 %v332_v2, %v331_v59  ;;  %v309_v5 = vadd.f32 %v308_v48, %v307_v41  ;;  %v323_v21 = vsel %vm180_vm0, %v270_v7, 0.0 }
  0xa1   :  { %v346_v60 = vsel %vm180_vm0, %v276_v19, 0.0  ;;  %v347_v26 = vsel %vm180_vm0, %v277_v23, 0.0  ;;  %v349_v22 = vsel %vm180_vm0, %v278_v29, 0.0  ;;  %v336_v11 = vsel %vm180_vm0, %v274_v13, 0.0 }
  0xa2   :  { %v322_v20 = vadd.f32 %v321_v6, %v320_v10  ;;  %v335_v9 = vadd.f32 %v334_v14, %v333_v15  ;;  %v310_v58 = vrot.slane %v309_v5, 4  ;;  %v338_v27 = vsel %vm180_vm0, %v275_v17, 0.0 }
  0xa3   :  { %v348_v28 = vadd.f32 %v347_v26, %v346_v60  ;;  %v361_v16 = vadd.f32 %v3350_v63, %v3333_v56  ;;  %v3639_v7 = vmax.f32 %v3256_v8, 0.0  ;;  %v374_v23 = vadd.f32 %v3370_v54, %v3355_v0 }
  0xa4   :  { %v324_v12 = vadd.f32 %v323_v21, %v322_v20  ;;  %v337_v32 = vadd.f32 %v336_v11, %v335_v9  ;;  %v311_v34 = vadd.f32 %v310_v58, %v309_v5  ;;  %v3640_v24 = vmax.f32 %v3272_v18, 0.0  ;;  %v122_v58 = vld [vmem:[#allocation2 + $0x30] sm:$0xff] }
  0xa5   :  { %v362_v19 = vsel %vm180_vm0, %v3639_v7, 0.0  ;;  %v350_v38 = vadd.f32 %v349_v22, %v348_v28  ;;  %v3476_v17 = vadd.f32 %v239_v4, %v238_v1  ;;  %v351_v40 = vsel %vm180_vm0, %v279_v43, 0.0 }
  0xa6   :  { %v375_v13 = vsel %vm180_vm0, %v3640_v24, 0.0  ;;  %v325_v39 = vrot.slane %v324_v12, 4  ;;  %v339_v25 = vadd.f32 %v338_v27, %v337_v32  ;;  %v312_v56 = vrot.slane %v311_v34, 2  ;;  %v123_v32 = vld [vmem:[#allocation2 + $0x38] sm:$0xff] }
  0xa7   :  { %v352_v63 = vadd.f32 %v351_v40, %v350_v38  ;;  %v353_v51 = vsel %vm180_vm0, %v280_v47, 0.0  ;;  %v3480_v29 = vadd.f32 %v362_v19, %v361_v16  ;;  %v3482_v31 = vadd.f32 %v375_v13, %v374_v23  ;;  %v130_v19 = vld [vmem:[#allocation2 + $0x70] sm:$0xff]  ;;  %v139_v13 = vld [vmem:[#allocation2 + $0xb8] sm:$0xff] }
  0xa8   :  { %v326_v0 = vadd.f32 %v325_v39, %v324_v12  ;;  %v340_v54 = vrot.slane %v339_v25, 4  ;;  %v387_v45 = vadd.f32 %v3385_v55, %v3380_v62  ;;  %v313_v52 = vadd.f32 %v312_v56, %v311_v34  ;;  %v131_v34 = vld [vmem:[#allocation2 + $0x78] sm:$0xff]  ;;  %v146_v39 = vld [vmem:[#allocation2 + $0xf0] sm:$0xff] }
  0xa9   :  { %v354_v1 = vadd.f32 %v353_v51, %v352_v63  ;;  %v3641_v43 = vmax.f32 %v3290_v30, 0.0  ;;  %v3642_v47 = vmov %v3639_v7  ;;  %v400_v53 = vadd.f32 %v3396_v46, %v3391_v50  ;;  %v3517_v63 = vld [vmem:[#allocation2 + $0xf8] sm:$0xff] }
  0xaa   :  { %v425_v44 = vrot.slane %v3642_v47, 3  ;;  %v327_v49 = vrot.slane %v326_v0, 2  ;;  %v341_v33 = vadd.f32 %v340_v54, %v339_v25  ;;  %v3643_v57 = vmov %v3640_v24  ;;  %v138_v24 = vld [vmem:[#allocation2 + $0xb0] sm:$0xff] }
  0xab   :  { %v388_v35 = vsel %vm180_vm0, %v3641_v43, 0.0  ;;  %v428_v41 = vrot.slane %v3643_v57, 3  ;;  %v314_v55 = vrot.slane %v313_v52, 1  ;;  %v355_v62 = vrot.slane %v354_v1, 4 }
  0xac   :  { %v3644_v59 = vmax.f32 %v3308_v42, 0.0  ;;  %v3645_v4 = vmov %v3641_v43  ;;  %v328_v8 = vadd.f32 %v327_v49, %v326_v0  ;;  %v342_v15 = vrot.slane %v341_v33, 2 }
  0xad   :  { %v431_v10 = vrot.slane %v3645_v4, 3  ;;  %v449_v14 = vadd.f32 %v308_v48, %v306_v37  ;;  %v450_v5 = vsel %vm180_vm0, %v425_v44, 0.0  ;;  %vm520_vm6 = vcmask 1047559  }
  0xae   :  { %v401_v2 = vsel %vm180_vm0, %v3644_v59, 0.0  ;;  %v356_v60 = vadd.f32 %v355_v62, %v354_v1  ;;  %v389_v50 = vadd.f32 %v388_v35, %v387_v45  ;;  %v462_v46 = vadd.f32 %v323_v21, %v321_v6 }
  0xaf   :  { %v463_v18 = vsel %vm180_vm0, %v428_v41, 0.0  ;;  %vm539_vm7 = vcmask 1043456   ;;  %v315_v20 = vadd.f32 %v314_v55, %v313_v52  ;;  %v329_v9 = vrot.slane %v328_v8, 1 }
  0xb0   :  { %v343_v26 = vadd.f32 %v342_v15, %v341_v33  ;;  %v402_v22 = vadd.f32 %v401_v2, %v400_v53  ;;  %vm551_vm8 = vcmask 130048   ;;  %v357_v30 = vrot.slane %v356_v60, 2 }
  0xb1   :  { %v3646_v28 = vmov %v3644_v59  ;;  %v3504_v37 = vadd.f32 %v450_v5, %v449_v14  ;;  %v475_v48 = vadd.f32 %v338_v27, %v336_v11  ;;  %v330_v16 = vadd.f32 %v329_v9, %v328_v8 }
  0xb2   :  { %v434_v12 = vrot.slane %v3646_v28, 3  ;;  %v344_v7 = vrot.slane %v343_v26, 1  ;;  %v3506_v6 = vadd.f32 %v463_v18, %v462_v46  ;;  %v476_v21 = vsel %vm180_vm0, %v431_v10, 0.0 }
  0xb3   :  { %v358_v38 = vadd.f32 %v357_v30, %v356_v60  ;;  %v3509_v23 = vadd.f32 %v353_v51, %v351_v40  ;;  %v506_v42 = vsel %vm505_vm1, %v3450_v36, %v3446_v3  ;;  %v154_v11 = vmax.f32 %v122_v58, 0.0 }
  0xb4   :  { %v345_v27 = vadd.f32 %v344_v7, %v343_v26  ;;  %v508_v25 = vsel %vm507_vm2, %v3454_v61, %v506_v42  ;;  %v517_v56 = vsel %vm516_vm3, %v330_v16, %v315_v20  ;;  %v155_v0 = vmax.f32 %v123_v32, 0.0 }
  0xb5   :  { %v359_v54 = vrot.slane %v358_v38, 1  ;;  %v510_v40 = vsel %vm509_vm4, %v3476_v17, %v508_v25  ;;  %v162_v51 = vmax.f32 %v130_v19, 0.0  ;;  %v163_v45 = vmax.f32 %v131_v34, 0.0 }
  0xb6   :  { %v519_v3 = vsel %vm518_vm5, %v345_v27, %v517_v56  ;;  %v170_v36 = vmax.f32 %v138_v24, 0.0  ;;  %v171_v52 = vmax.f32 %v139_v13, 0.0  ;;  %v178_v1 = vmax.f32 %v146_v39, 0.0 }
  0xb7   :  { %v360_v43 = vadd.f32 %v359_v54, %v358_v38  ;;  %v179_v35 = vmax.f32 %v3517_v63, 0.0  ;;  %v364_v61 = vsel %vm180_vm0, %v154_v11, 0.0  ;;  %v366_v47 = vsel %vm180_vm0, %v155_v0, 0.0 }
  0xb8   :  { %v365_v44 = vadd.f32 %v364_v61, %v3480_v29  ;;  %v377_v49 = vsel %vm180_vm0, %v162_v51, 0.0  ;;  %v379_v17 = vsel %vm180_vm0, %v163_v45, 0.0  ;;  %v390_v33 = vsel %vm180_vm0, %v170_v36, 0.0 }
  0xb9   :  { %v521_v53 = vsel %vm520_vm6, %v360_v43, %v519_v3  ;;  %v378_v57 = vadd.f32 %v377_v49, %v3482_v31  ;;  %v391_v41 = vadd.f32 %v390_v33, %v389_v50  ;;  %v392_v55 = vsel %vm180_vm0, %v171_v52, 0.0  ;;  %v738_v43 = vld [vmem:[#allocation8 + $0x338] sm:$0xff] }
  0xba   :  { %v540_v62 = vsel %vm539_vm7, %v510_v40, %v521_v53  ;;  %v367_v59 = vadd.f32 %v366_v47, %v365_v44  ;;  %v403_v2 = vsel %vm180_vm0, %v178_v1, 0.0  ;;  %v405_v29 = vsel %vm180_vm0, %v179_v35, 0.0  ;;  %v734_v44 = vld [vmem:[#allocation8 + $0x318] sm:$0xff]  ;;  %v740_v53 = vld [vmem:[#allocation8 + $0x348] sm:$0xff] }
  0xbb   :  { %2382 = vmatprep.mubr.msk.f32.mxu0 %vm551_vm8, %v540_v62  ;;  %v380_v4 = vadd.f32 %v379_v17, %v378_v57  ;;  %v393_v10 = vadd.f32 %v392_v55, %v391_v41  ;;  %v404_v8 = vadd.f32 %v403_v2, %v402_v22  ;;  %v426_v15 = vrot.slane %v154_v11, 3  ;;  %v731_v57 = vld [vmem:[#allocation8 + $0x300] sm:$0xff]  ;;  %v737_v41 = vld [vmem:[#allocation8 + $0x330] sm:$0xff]  ;;  %v744_v2 = vld [vmem:[#allocation8 + $0x368] sm:$0xff] }
  0xbc   :  { %v477_v14 = vadd.f32 %v476_v21, %v475_v48  ;;  %v368_v5 = vrot.slane %v367_v59, 4  ;;  %v427_v60 = vrot.slane %v155_v0, 3  ;;  %v429_v31 = vrot.slane %v162_v51, 3 }
  0xbd   :  { %v489_v50 = vsel %vm180_vm0, %v434_v12, 0.0  ;;  %v381_v46 = vrot.slane %v380_v4, 4  ;;  %v394_v18 = vrot.slane %v393_v10, 4  ;;  %v406_v20 = vadd.f32 %v405_v29, %v404_v8 }
  0xbe   :  { %v369_v9 = vadd.f32 %v368_v5, %v367_v59  ;;  %v430_v26 = vrot.slane %v163_v45, 3  ;;  %v432_v58 = vrot.slane %v170_v36, 3  ;;  %v433_v30 = vrot.slane %v171_v52, 3  ;;  %v749_v5 = vld [vmem:[#allocation8 + $0x390] sm:$0xff] }
  0xbf   :  { %v382_v28 = vadd.f32 %v381_v46, %v380_v4  ;;  %v395_v32 = vadd.f32 %v394_v18, %v393_v10  ;;  %v407_v16 = vrot.slane %v406_v20, 4  ;;  %v452_v7 = vsel %vm180_vm0, %v426_v15, 0.0  ;;  %v750_v15 = vld [vmem:[#allocation8 + $0x398] sm:$0xff] }
  0xc0   :  { %v370_v22 = vrot.slane %v369_v9, 2  ;;  %v453_v48 = vadd.f32 %v452_v7, %v3504_v37  ;;  %v454_v21 = vsel %vm180_vm0, %v427_v60, 0.0  ;;  %v465_v19 = vsel %vm180_vm0, %v429_v31, 0.0 }
  0xc1   :  { %v383_v12 = vrot.slane %v382_v28, 2  ;;  %v408_v34 = vadd.f32 %v407_v16, %v406_v20  ;;  %v435_v38 = vrot.slane %v178_v1, 3  ;;  %v466_v42 = vadd.f32 %v465_v19, %v3506_v6  ;;  %v732_v1 = vld [vmem:[#allocation8 + $0x308] sm:$0xff]  ;;  %v755_v19 = vld [vmem:[#allocation8 + $0x3c0] sm:$0xff] }
  0xc2   :  { %v396_v24 = vrot.slane %v395_v32, 2  ;;  %v455_v13 = vadd.f32 %v454_v21, %v453_v48  ;;  %v467_v39 = vsel %vm180_vm0, %v430_v26, 0.0  ;;  %v478_v11 = vsel %vm180_vm0, %v432_v58, 0.0  ;;  %v756_v58 = vld [vmem:[#allocation8 + $0x3c8] sm:$0xff] }
  0xc3   :  { %v490_v27 = vadd.f32 %v489_v50, %v3509_v23  ;;  %v371_v25 = vadd.f32 %v370_v22, %v369_v9  ;;  %v384_v56 = vadd.f32 %v383_v12, %v382_v28  ;;  %v468_v37 = vadd.f32 %v467_v39, %v466_v42  ;;  %v761_v12 = vld [vmem:[#allocation8 + $0x3f0] sm:$0xff] }
  0xc4   :  { %v436_v63 = vrot.slane %v179_v35, 3  ;;  %v456_v0 = vrot.slane %v455_v13, 4  ;;  %v479_v54 = vadd.f32 %v478_v11, %v477_v14  ;;  %v480_v40 = vsel %vm180_vm0, %v433_v30, 0.0  ;;  %v743_v14 = vld [vmem:[#allocation8 + $0x360] sm:$0xff]  ;;  %v762_v30 = vld [vmem:[#allocation8 + $0x3f8] sm:$0xff] }
  0xc5   :  { %v409_v51 = vrot.slane %v408_v34, 2  ;;  %v469_v45 = vrot.slane %v468_v37, 4  ;;  %v397_v3 = vadd.f32 %v396_v24, %v395_v32  ;;  %v491_v52 = vsel %vm180_vm0, %v435_v38, 0.0  ;;  %v768_v24 = vld [vmem:[#allocation8 + $0x428] sm:$0xff] }
  0xc6   :  { %v457_v6 = vadd.f32 %v456_v0, %v455_v13  ;;  %v481_v36 = vadd.f32 %v480_v40, %v479_v54  ;;  %v372_v61 = vrot.slane %v371_v25, 1  ;;  %v385_v47 = vrot.slane %v384_v56, 1  ;;  %v774_v13 = vld [vmem:[#allocation8 + $0x458] sm:$0xff]  ;;  %v767_v40 = vld [vmem:[#allocation8 + $0x420] sm:$0xff] }
  0xc7   :  { %v470_v23 = vadd.f32 %v469_v45, %v468_v37  ;;  %v492_v35 = vadd.f32 %v491_v52, %v490_v27  ;;  %v493_v33 = vsel %vm180_vm0, %v436_v63, 0.0  ;;  %v410_v55 = vadd.f32 %v409_v51, %v408_v34  ;;  %v773_v51 = vld [vmem:[#allocation8 + $0x450] sm:$0xff] }
  0xc8   :  { %v458_v49 = vrot.slane %v457_v6, 2  ;;  %v482_v17 = vrot.slane %v481_v36, 4  ;;  %v2389_v59 = vpack.c.bf16 %v738_v43, %v732_v1  ;;  %v398_v29 = vrot.slane %v397_v3, 1  ;;  %v733_v52 = vld [vmem:[#allocation8 + $0x310] sm:$0xff]  ;;  %v739_v1 = vld [vmem:[#allocation8 + $0x340] sm:$0xff] }
  0xc9   :  { %v471_v62 = vrot.slane %v470_v23, 2  ;;  %v494_v8 = vadd.f32 %v493_v33, %v492_v35  ;;  %v373_v60 = vadd.f32 %v372_v61, %v371_v25  ;;  %v2421_v50 = vpack.c.bf16 %v740_v53, %v734_v44  ;;  %v746_v61 = vld [vmem:[#allocation8 + $0x378] sm:$0xff]  ;;  %v779_v35 = vld [vmem:[#allocation8 + $0x480] sm:$0xff]  ;;  %v785_v33 = vld [vmem:[#allocation8 + $0x4b0] sm:$0xff] }
  0xca   :  { %v459_v4 = vadd.f32 %v458_v49, %v457_v6  ;;  %v483_v10 = vadd.f32 %v482_v17, %v481_v36  ;;  %2390 = vmatprep.subr.bf16.mxu1 %v2389_v59  ;;  %v2391_v46 = vpack.c.bf16 %v737_v41, %v731_v57  ;;  %v386_v18 = vadd.f32 %v385_v47, %v384_v56  ;;  %v786_v6 = vld [vmem:[#allocation8 + $0x4b8] sm:$0xff]  ;;  %v752_v47 = vld [vmem:[#allocation8 + $0x3a8] sm:$0xff]  ;;  %v745_v59 = vld [vmem:[#allocation8 + $0x370] sm:$0xff] }
  0xcb   :  { %v472_v31 = vadd.f32 %v471_v62, %v470_v23  ;;  %v495_v26 = vrot.slane %v494_v8, 4  ;;  %v411_v28 = vrot.slane %v410_v55, 1  ;;  %2422 = vmatprep.subr.bf16.mxu0 %v2421_v50  ;;  %v2393_v16 = vpack.c.bf16 %v750_v15, %v744_v2  ;;  %v792_v57 = vld [vmem:[#allocation8 + $0x4e8] sm:$0xff]  ;;  %v798_v41 = vld [vmem:[#allocation8 + $0x518] sm:$0xff]  ;;  %v751_v2 = vld [vmem:[#allocation8 + $0x3a0] sm:$0xff] }
  0xcc   :  { %v460_v20 = vrot.slane %v459_v4, 1  ;;  %v484_v9 = vrot.slane %v483_v10, 2  ;;  %2392 = vmatpush1.bf16.msra.mxu1 %v2391_v46  ;;  %v2395_v7 = vpack.c.bf16 %v749_v5, %v743_v14  ;;  %v399_v34 = vadd.f32 %v398_v29, %v397_v3  ;;  %v780_v3 = vld [vmem:[#allocation8 + $0x488] sm:$0xff]  ;;  %v791_v14 = vld [vmem:[#allocation8 + $0x4e0] sm:$0xff]  ;;  %v797_v5 = vld [vmem:[#allocation8 + $0x510] sm:$0xff] }
  0xcd   :  { %v473_v32 = vrot.slane %v472_v31, 1  ;;  %v496_v21 = vadd.f32 %v495_v26, %v494_v8  ;;  %2394 = vmatprep.subr.bf16.mxu1 %v2393_v16  ;;  %v2397_v42 = vpack.c.bf16 %v762_v30, %v756_v58  ;;  %v527_v27 = vsel %vm505_vm1, %v386_v18, %v373_v60  ;;  %v810_v50 = vld [vmem:[#allocation8 + $0x578] sm:$0xff]  ;;  %v757_v18 = vld [vmem:[#allocation8 + $0x3d0] sm:$0xff]  ;;  %v776_v26 = vld [vmem:[#allocation8 + $0x468] sm:$0xff] }
  0xce   :  { %v461_v22 = vadd.f32 %v460_v20, %v459_v4  ;;  %v485_v48 = vadd.f32 %v484_v9, %v483_v10  ;;  %v412_v25 = vadd.f32 %v411_v28, %v410_v55  ;;  %v2399_v56 = vpack.c.bf16 %v761_v12, %v755_v19  ;;  %v758_v4 = vld [vmem:[#allocation8 + $0x3d8] sm:$0xff]  ;;  %v764_v10 = vld [vmem:[#allocation8 + $0x408] sm:$0xff]  ;;  %v763_v20 = vld [vmem:[#allocation8 + $0x400] sm:$0xff] }
  0xcf   :  { %v474_v38 = vadd.f32 %v473_v32, %v472_v31  ;;  %v497_v11 = vrot.slane %v496_v21, 2  ;;  %v2401_v54 = vpack.c.bf16 %v774_v13, %v768_v24  ;;  %v528_v45 = vsel %vm507_vm2, %v399_v34, %v527_v27  ;;  %v804_v31 = vld [vmem:[#allocation8 + $0x548] sm:$0xff]  ;;  %v770_v9 = vld [vmem:[#allocation8 + $0x438] sm:$0xff]  ;;  %v769_v16 = vld [vmem:[#allocation8 + $0x430] sm:$0xff] }
  0xd0   :  { %v486_v39 = vrot.slane %v485_v48, 1  ;;  %2396 = vmatpush1.bf16.msra.mxu1 %v2395_v7  ;;  %v2403_v23 = vpack.c.bf16 %v773_v51, %v767_v40  ;;  %v529_v49 = vsel %vm509_vm4, %v412_v25, %v528_v45  ;;  %v2405_v17 = vpack.c.bf16 %v786_v6, %v780_v3  ;;  %v775_v7 = vld [vmem:[#allocation8 + $0x460] sm:$0xff]  ;;  %v781_v12 = vld [vmem:[#allocation8 + $0x490] sm:$0xff]  ;;  %v806_v27 = vld [vmem:[#allocation8 + $0x558] sm:$0xff] }
  0xd1   :  { %v498_v63 = vadd.f32 %v497_v11, %v496_v21  ;;  %v535_v0 = vsel %vm516_vm3, %v474_v38, %v461_v22  ;;  %2398 = vmatprep.subr.bf16.mxu1 %v2397_v42  ;;  %v2423_v53 = vpack.c.bf16 %v739_v1, %v733_v52  ;;  %v2425_v62 = vpack.c.bf16 %v752_v47, %v746_v61  ;;  %v782_v22 = vld [vmem:[#allocation8 + $0x498] sm:$0xff]  ;;  %v787_v34 = vld [vmem:[#allocation8 + $0x4c0] sm:$0xff]  ;;  %v800_v42 = vld [vmem:[#allocation8 + $0x528] sm:$0xff] }
  0xd2   :  { %v487_v37 = vadd.f32 %v486_v39, %v485_v48  ;;  %v2407_v8 = vpack.c.bf16 %v785_v33, %v779_v35  ;;  %v2409_v15 = vpack.c.bf16 %v798_v41, %v792_v57  ;;  %v2427_v60 = vpack.c.bf16 %v751_v2, %v745_v59  ;;  %v788_v48 = vld [vmem:[#allocation8 + $0x4c8] sm:$0xff]  ;;  %v794_v38 = vld [vmem:[#allocation8 + $0x4f8] sm:$0xff]  ;;  %v793_v39 = vld [vmem:[#allocation8 + $0x4f0] sm:$0xff] }
  0xd3   :  { %v499_v36 = vrot.slane %v498_v63, 1  ;;  %v2429_v46 = vpack.c.bf16 %v764_v10, %v758_v4  ;;  %v2411_v58 = vpack.c.bf16 %v797_v5, %v791_v14  ;;  %v2413_v30 = vpack.c.bf16 %v810_v50, %v804_v31  ;;  %v799_v11 = vld [vmem:[#allocation8 + $0x520] sm:$0xff]  ;;  %v812_v25 = vld [vmem:[#allocation8 + $0x588] sm:$0xff]  ;;  %v822_v6 = vld [vmem:[#allocation8 + $0x5d8] sm:$0xff] }
  0xd4   :  { %v536_v43 = vsel %vm518_vm5, %v487_v37, %v535_v0  ;;  %2400 = vmatpush1.bf16.msra.mxu1 %v2399_v56  ;;  %v2431_v28 = vpack.c.bf16 %v763_v20, %v757_v18  ;;  %v2433_v32 = vpack.c.bf16 %v776_v26, %v770_v9  ;;  %v2435_v21 = vpack.c.bf16 %v775_v7, %v769_v16  ;;  %v809_v0 = vld [vmem:[#allocation8 + $0x570] sm:$0xff]  ;;  %v811_v51 = vld [vmem:[#allocation8 + $0x580] sm:$0xff]  ;;  %v816_v3 = vld [vmem:[#allocation8 + $0x5a8] sm:$0xff] }
  0xd5   :  { %v500_v44 = vadd.f32 %v499_v36, %v498_v63  ;;  %2402 = vmatprep.subr.bf16.mxu1 %v2401_v54  ;;  %v2437_v19 = vpack.c.bf16 %v788_v48, %v782_v22  ;;  %v2439_v24 = vpack.c.bf16 %v787_v34, %v781_v12  ;;  %v2441_v13 = vpack.c.bf16 %v800_v42, %v794_v38  ;;  %v803_v63 = vld [vmem:[#allocation8 + $0x540] sm:$0xff]  ;;  %v805_v54 = vld [vmem:[#allocation8 + $0x550] sm:$0xff]  ;;  %v818_v52 = vld [vmem:[#allocation8 + $0x5b8] sm:$0xff] }
  0xd6   :  { %v2443_v56 = vpack.c.bf16 %v799_v11, %v793_v39  ;;  %v2445_v37 = vpack.c.bf16 %v812_v25, %v806_v27  ;;  %v2415_v40 = vpack.c.bf16 %v809_v0, %v803_v63  ;;  %v2447_v45 = vpack.c.bf16 %v811_v51, %v805_v54  ;;  %v824_v1 = vld [vmem:[#allocation8 + $0x5e8] sm:$0xff]  ;;  %v821_v47 = vld [vmem:[#allocation8 + $0x5d0] sm:$0xff]  ;;  %v742_v33 = vld [vmem:[#allocation8 + $0x358] sm:$0xff] }
  0xd7   :  { %v537_v55 = vsel %vm520_vm6, %v500_v44, %v536_v43  ;;  %v2417_v36 = vpack.c.bf16 %v822_v6, %v816_v3  ;;  %v815_v43 = vld [vmem:[#allocation8 + $0x5a0] sm:$0xff]  ;;  %v2449_v61 = vpack.c.bf16 %v824_v1, %v818_v52  ;;  %v736_v35 = vld [vmem:[#allocation8 + $0x328] sm:$0xff]  ;;  %v2265_v59 = vld [vmem:[#allocation7] ss:$0 sm:$0xff] }
  0xd8   :  { %v541_v29 = vsel %vm539_vm7, %v529_v49, %v537_v55  ;;  %2404 = vmatpush1.bf16.msra.mxu1 %v2403_v23  ;;  %v817_v23 = vld [vmem:[#allocation8 + $0x5b0] sm:$0xff]  ;;  %v823_v44 = vld [vmem:[#allocation8 + $0x5e0] sm:$0xff]  ;;  %v2419_v49 = vpack.c.bf16 %v821_v47, %v815_v43  ;;  %v2453_v57 = vpack.c.bf16 %v742_v33, %v736_v35  ;;  %v644_v41 = vld [vmem:[#allocation8 + $0x48] sm:$0xff]  ;;  %v3097_v55 = vmov 0.0  }
  0xd9   :  { %2383 = vmatmul.mubr.msk.f32.vlgmr.msra.gmra.mrb[0].mxu0 %vm551_vm8, %v541_v29  ;;  %2406 = vmatprep.subr.bf16.mxu1 %v2405_v17  ;;  %v2451_v17 = vpack.c.bf16 %v823_v44, %v817_v23  ;;  %v735_v10 = vld [vmem:[#allocation8 + $0x320] sm:$0xff]  ;;  %v637_v14 = vld [vmem:[#allocation8 + $0x10] sm:$0xff]  ;;  %v754_v31 = vld [vmem:[#allocation8 + $0x3b8] sm:$0xff] }
  0xda   :  { %2424 = vmatpush1.bf16.msra.mxu0 %v2423_v53  ;;  %v638_v53 = vld [vmem:[#allocation8 + $0x18] sm:$0xff]  ;;  %894 = vmatprep.mubr.f32.mxu1 %v3097_v55  ;;  %v643_v5 = vld [vmem:[#allocation8 + $0x40] sm:$0xff]  ;;  %v649_v16 = vld [vmem:[#allocation8 + $0x70] sm:$0xff] }
  0xdb   :  { %2426 = vmatprep.subr.bf16.mxu0 %v2425_v62  ;;  %965 = vmatprep.mubr.f32.mxu0 %v3097_v55  ;;  %v2517_v62 = vpack.c.bf16 %v644_v41, %v638_v53  ;;  %v650_v50 = vld [vmem:[#allocation8 + $0x78] sm:$0xff]  ;;  %v2519_v9 = vpack.c.bf16 %v643_v5, %v637_v14  ;;  %v747_v26 = vld [vmem:[#allocation8 + $0x380] sm:$0xff]  ;;  %v760_v22 = vld [vmem:[#allocation8 + $0x3e8] sm:$0xff] }
  0xdc   :  { %2408 = vmatpush1.bf16.msra.mxu1 %v2407_v8  ;;  %v741_v8 = vld [vmem:[#allocation8 + $0x350] sm:$0xff]  ;;  %v655_v7 = vld [vmem:[#allocation8 + $0xa0] sm:$0xff]  ;;  %v766_v48 = vld [vmem:[#allocation8 + $0x418] sm:$0xff] }
  0xdd   :  { %2410 = vmatprep.subr.bf16.mxu1 %v2409_v15  ;;  %v2455_v20 = vpack.c.bf16 %v741_v8, %v735_v10  ;;  %v2523_v34 = vpack.c.bf16 %v655_v7, %v649_v16  ;;  %v759_v38 = vld [vmem:[#allocation8 + $0x3e0] sm:$0xff]  ;;  %v765_v42 = vld [vmem:[#allocation8 + $0x410] sm:$0xff]  ;;  %v772_v27 = vld [vmem:[#allocation8 + $0x448] sm:$0xff] }
  0xde   :  { %2428 = vmatpush1.bf16.msra.mxu0 %v2427_v60  ;;  %v748_v60 = vld [vmem:[#allocation8 + $0x388] sm:$0xff]  ;;  %v661_v39 = vld [vmem:[#allocation8 + $0xd0] sm:$0xff]  ;;  %v667_v11 = vld [vmem:[#allocation8 + $0x100] sm:$0xff]  ;;  %v2463_v63 = vpack.c.bf16 %v765_v42, %v759_v38 }
  0xdf   :  { %2430 = vmatprep.subr.bf16.mxu0 %v2429_v46  ;;  %v656_v46 = vld [vmem:[#allocation8 + $0xa8] sm:$0xff]  ;;  %v778_v25 = vld [vmem:[#allocation8 + $0x478] sm:$0xff]  ;;  %v2527_v0 = vpack.c.bf16 %v667_v11, %v661_v39  ;;  %v771_v54 = vld [vmem:[#allocation8 + $0x440] sm:$0xff] }
  0xe0   :  { %2412 = vmatpush1.bf16.msra.mxu1 %v2411_v58  ;;  %v753_v58 = vld [vmem:[#allocation8 + $0x3b0] sm:$0xff]  ;;  %v2465_v51 = vpack.c.bf16 %v778_v25, %v772_v27  ;;  %v679_v6 = vld [vmem:[#allocation8 + $0x160] sm:$0xff]  ;;  %v790_v52 = vld [vmem:[#allocation8 + $0x4d8] sm:$0xff] }
  0xe1   :  { %2414 = vmatprep.subr.bf16.mxu1 %v2413_v30  ;;  %v2459_v12 = vpack.c.bf16 %v753_v58, %v747_v26  ;;  %v673_v3 = vld [vmem:[#allocation8 + $0x130] sm:$0xff]  ;;  %v686_v1 = vld [vmem:[#allocation8 + $0x198] sm:$0xff]  ;;  %v692_v43 = vld [vmem:[#allocation8 + $0x1c8] sm:$0xff] }
  0xe2   :  { %2432 = vmatpush1.bf16.msra.mxu0 %v2431_v28  ;;  %v2457_v28 = vpack.c.bf16 %v754_v31, %v748_v60  ;;  %v2531_v47 = vpack.c.bf16 %v679_v6, %v673_v3  ;;  %v783_v23 = vld [vmem:[#allocation8 + $0x4a0] sm:$0xff]  ;;  %v789_v44 = vld [vmem:[#allocation8 + $0x4d0] sm:$0xff]  ;;  %v796_v53 = vld [vmem:[#allocation8 + $0x508] sm:$0xff] }
  0xe3   :  { %2434 = vmatprep.subr.bf16.mxu0 %v2433_v32  ;;  %v2521_v32 = vpack.c.bf16 %v656_v46, %v650_v50  ;;  %v685_v35 = vld [vmem:[#allocation8 + $0x190] sm:$0xff]  ;;  %v691_v33 = vld [vmem:[#allocation8 + $0x1c0] sm:$0xff]  ;;  %v698_v41 = vld [vmem:[#allocation8 + $0x1f8] sm:$0xff] }
  0xe4   :  { %2416 = vmatpush1.bf16.msra.mxu1 %v2415_v40  ;;  %v777_v40 = vld [vmem:[#allocation8 + $0x470] sm:$0xff]  ;;  %v703_v5 = vld [vmem:[#allocation8 + $0x220] sm:$0xff]  ;;  %v808_v60 = vld [vmem:[#allocation8 + $0x568] sm:$0xff] }
  0xe5   :  { %2418 = vmatprep.subr.bf16.mxu1 %v2417_v36  ;;  %v784_v36 = vld [vmem:[#allocation8 + $0x4a8] sm:$0xff]  ;;  %v801_v10 = vld [vmem:[#allocation8 + $0x530] sm:$0xff]  ;;  %v814_v31 = vld [vmem:[#allocation8 + $0x598] sm:$0xff] }
  0xe6   :  { %2436 = vmatpush1.bf16.msra.mxu0 %v2435_v21  ;;  %v662_v21 = vld [vmem:[#allocation8 + $0xd8] sm:$0xff]  ;;  %v697_v14 = vld [vmem:[#allocation8 + $0x1f0] sm:$0xff]  ;;  %v716_v46 = vld [vmem:[#allocation8 + $0x288] sm:$0xff] }
  0xe7   :  { %2438 = vmatprep.subr.bf16.mxu0 %v2437_v19  ;;  %v668_v19 = vld [vmem:[#allocation8 + $0x108] sm:$0xff]  ;;  %v710_v50 = vld [vmem:[#allocation8 + $0x258] sm:$0xff]  ;;  %v807_v26 = vld [vmem:[#allocation8 + $0x560] sm:$0xff] }
  0xe8   :  { %2420 = vmatpush1.bf16.msra.mxu1 %v2419_v49  ;;  %v2469_v49 = vpack.c.bf16 %v790_v52, %v784_v36  ;;  %v813_v58 = vld [vmem:[#allocation8 + $0x590] sm:$0xff]  ;;  %v715_v7 = vld [vmem:[#allocation8 + $0x280] sm:$0xff]  ;;  %v636_v27 = vld [vmem:[#allocation8 + $0x8] sm:$0xff] }
  0xe9   :  { %2454 = vmatprep.subr.bf16.mxu1 %v2453_v57  ;;  %v802_v57 = vld [vmem:[#allocation8 + $0x538] sm:$0xff]  ;;  %v709_v16 = vld [vmem:[#allocation8 + $0x250] sm:$0xff]  ;;  %v819_v38 = vld [vmem:[#allocation8 + $0x5c0] sm:$0xff] }
  0xea   :  { %2440 = vmatpush1.bf16.msra.mxu0 %v2439_v24  ;;  %v2461_v24 = vpack.c.bf16 %v766_v48, %v760_v22  ;;  %v2473_v8 = vpack.c.bf16 %v802_v57, %v796_v53  ;;  %v820_v22 = vld [vmem:[#allocation8 + $0x5c8] sm:$0xff]  ;;  %v826_v48 = vld [vmem:[#allocation8 + $0x5f8] sm:$0xff]  ;;  %v825_v42 = vld [vmem:[#allocation8 + $0x5f0] sm:$0xff] }
  0xeb   :  { %2442 = vmatprep.subr.bf16.mxu0 %v2441_v13  ;;  %v2525_v13 = vpack.c.bf16 %v668_v19, %v662_v21  ;;  %v722_v21 = vld [vmem:[#allocation8 + $0x2b8] sm:$0xff]  ;;  %v728_v19 = vld [vmem:[#allocation8 + $0x2e8] sm:$0xff]  ;;  %v721_v39 = vld [vmem:[#allocation8 + $0x2b0] sm:$0xff] }
  0xec   :  { %v727_v11 = vld [vmem:[#allocation8 + $0x2e0] sm:$0xff]  ;;  %v642_v25 = vld [vmem:[#allocation8 + $0x38] sm:$0xff]  ;;  %v1258_v3 = vld [vmem:[#allocation8 + $0x610] sm:$0xff] }
  0xed   :  { %v1264_v6 = vld [vmem:[#allocation8 + $0x640] sm:$0xff]  ;;  %v648_v36 = vld [vmem:[#allocation8 + $0x68] sm:$0xff]  ;;  %v654_v52 = vld [vmem:[#allocation8 + $0x98] sm:$0xff] }
  0xee   :  { %2444 = vmatpush1.bf16.msra.mxu0 %v2443_v56  ;;  %v674_v56 = vld [vmem:[#allocation8 + $0x138] sm:$0xff]  ;;  %v660_v53 = vld [vmem:[#allocation8 + $0xc8] sm:$0xff] }
  0xef   :  { %2446 = vmatprep.subr.bf16.mxu0 %v2445_v37  ;;  %v680_v37 = vld [vmem:[#allocation8 + $0x168] sm:$0xff]  ;;  %v666_v57 = vld [vmem:[#allocation8 + $0xf8] sm:$0xff] }
  0xf2   :  { %2448 = vmatpush1.bf16.msra.mxu0 %v2447_v45  ;;  %v2529_v45 = vpack.c.bf16 %v680_v37, %v674_v56  ;;  %v1259_v56 = vld [vmem:[#allocation8 + $0x618] sm:$0xff]  ;;  %v1265_v37 = vld [vmem:[#allocation8 + $0x648] sm:$0xff] }
  0xf3   :  { %2450 = vmatprep.subr.bf16.mxu0 %v2449_v61  ;;  %v2467_v61 = vpack.c.bf16 %v777_v40, %v771_v54  ;;  %v635_v54 = vld [vmem:[#allocation8] sm:$0xff]  ;;  %v641_v40 = vld [vmem:[#allocation8 + $0x30] sm:$0xff] }
  0xf6   :  { %2452 = vmatpush1.bf16.msra.mxu0 %v2451_v17  ;;  %v2533_v17 = vpack.c.bf16 %v692_v43, %v686_v1  ;;  %v1271_v1 = vld [vmem:[#allocation8 + $0x678] sm:$0xff]  ;;  %v1277_v43 = vld [vmem:[#allocation8 + $0x6a8] sm:$0xff] }
  0xf7   :  { %2518 = vmatprep.subr.bf16.mxu0 %v2517_v62  ;;  %v704_v62 = vld [vmem:[#allocation8 + $0x228] sm:$0xff] }
 0x1ac   :  { %v2384_v2 = vpop.f32.mrb[0].mxu0 }
 0x1ad   :  { %v3558_v29 = vadd.f32 %v2384_v2, %v2265_v59  ;;  %v624_v4 = vpop.f32.mrb[1].mxu0  ;;  %v2535_v2 = vpack.c.bf16 %v691_v33, %v685_v35  ;;  %v1270_v35 = vld [vmem:[#allocation8 + $0x670] sm:$0xff]  ;;  %v1276_v33 = vld [vmem:[#allocation8 + $0x6a0] sm:$0xff] }
 0x1ae   :  { %v625_v15 = vadd.f32 %v2265_v59, %v624_v4  ;;  %v2471_v59 = vpack.c.bf16 %v789_v44, %v783_v23  ;;  %v795_v4 = vld [vmem:[#allocation8 + $0x500] sm:$0xff]  ;;  %v653_v44 = vld [vmem:[#allocation8 + $0x90] sm:$0xff] }
 0x1af   :  { %v647_v23 = vld [vmem:[#allocation8 + $0x60] sm:$0xff] }
 0x1b0   :  { %v3560_v18 = vmax.f32 %v625_v15, 0.0  ;;  %v2537_v15 = vpack.c.bf16 %v704_v62, %v698_v41  ;;  %v1283_v41 = vld [vmem:[#allocation8 + $0x6d8] sm:$0xff]  ;;  %v1289_v62 = vld [vmem:[#allocation8 + $0x708] sm:$0xff] }
 0x1b2   :  { %v3563_v30 = vrot.slane %v3560_v18, 4 }
 0x1b4   :  { %895 = vmatmul.mubr.f32.vlgmr.msra.gmra.mrb[0].mxu1 %v3563_v30  ;;  %966 = vmatmul.mubr.f32.vlgmr.msra.gmra.mrb[2].mxu0 %v3563_v30 }
 0x1b5   :  { %2456 = vmatpush1.bf16.msra.mxu1 %v2455_v20  ;;  %2520 = vmatpush1.bf16.msra.mxu0 %v2519_v9  ;;  %v2475_v20 = vpack.c.bf16 %v801_v10, %v795_v4  ;;  %v2539_v9 = vpack.c.bf16 %v703_v5, %v697_v14  ;;  %v659_v4 = vld [vmem:[#allocation8 + $0xc0] sm:$0xff]  ;;  %v665_v10 = vld [vmem:[#allocation8 + $0xf0] sm:$0xff] }
 0x1b6   :  { %2458 = vmatprep.subr.bf16.mxu1 %v2457_v28  ;;  %2522 = vmatprep.subr.bf16.mxu0 %v2521_v32  ;;  %v2477_v28 = vpack.c.bf16 %v814_v31, %v808_v60  ;;  %v2541_v32 = vpack.c.bf16 %v716_v46, %v710_v50  ;;  %v1282_v14 = vld [vmem:[#allocation8 + $0x6d0] sm:$0xff]  ;;  %v1288_v5 = vld [vmem:[#allocation8 + $0x700] sm:$0xff]  ;;  %v672_v60 = vld [vmem:[#allocation8 + $0x128] sm:$0xff] }
 0x1b7   :  { %1036 = vmatprep.mubr.f32.mxu1 %v3097_v55  ;;  %1178 = vmatprep.mubr.f32.mxu0 %v3097_v55  ;;  %v678_v31 = vld [vmem:[#allocation8 + $0x158] sm:$0xff]  ;;  %v1301_v46 = vld [vmem:[#allocation8 + $0x768] sm:$0xff] }
 0x1b8   :  { %v1295_v50 = vld [vmem:[#allocation8 + $0x738] sm:$0xff] }
 0x1b9   :  { %2460 = vmatpush1.bf16.msra.mxu1 %v2459_v12  ;;  %2524 = vmatpush1.bf16.msra.mxu0 %v2523_v34  ;;  %v2479_v12 = vpack.c.bf16 %v813_v58, %v807_v26  ;;  %v2543_v34 = vpack.c.bf16 %v715_v7, %v709_v16  ;;  %v677_v26 = vld [vmem:[#allocation8 + $0x150] sm:$0xff]  ;;  %v2497_v58 = vpack.c.bf16 %v678_v31, %v672_v60  ;;  %v1300_v16 = vld [vmem:[#allocation8 + $0x760] sm:$0xff]  ;;  %v684_v7 = vld [vmem:[#allocation8 + $0x188] sm:$0xff] }
 0x1ba   :  { %2462 = vmatprep.subr.bf16.mxu1 %v2461_v24  ;;  %2526 = vmatprep.subr.bf16.mxu0 %v2525_v13  ;;  %v2481_v24 = vpack.c.bf16 %v826_v48, %v820_v22  ;;  %v2545_v13 = vpack.c.bf16 %v728_v19, %v722_v21  ;;  %v690_v22 = vld [vmem:[#allocation8 + $0x1b8] sm:$0xff]  ;;  %v1313_v21 = vld [vmem:[#allocation8 + $0x7c8] sm:$0xff] }
 0x1bb   :  { %v1307_v48 = vld [vmem:[#allocation8 + $0x798] sm:$0xff] }
 0x1bc   :  { %v646_v60 = vld [vmem:[#allocation8 + $0x58] sm:$0xff] }
 0x1bd   :  { %2464 = vmatpush1.bf16.msra.mxu1 %v2463_v63  ;;  %2528 = vmatpush1.bf16.msra.mxu0 %v2527_v0  ;;  %v2483_v63 = vpack.c.bf16 %v825_v42, %v819_v38  ;;  %v2547_v0 = vpack.c.bf16 %v727_v11, %v721_v39  ;;  %v689_v38 = vld [vmem:[#allocation8 + $0x1b0] sm:$0xff]  ;;  %v2501_v42 = vpack.c.bf16 %v690_v22, %v684_v7  ;;  %v1312_v39 = vld [vmem:[#allocation8 + $0x7c0] sm:$0xff]  ;;  %v696_v11 = vld [vmem:[#allocation8 + $0x1e8] sm:$0xff] }
 0x1be   :  { %2466 = vmatprep.subr.bf16.mxu1 %v2465_v51  ;;  %2530 = vmatprep.subr.bf16.mxu0 %v2529_v45  ;;  %v2485_v51 = vpack.c.bf16 %v642_v25, %v636_v27  ;;  %v2613_v45 = vpack.c.bf16 %v1265_v37, %v1259_v56  ;;  %v702_v27 = vld [vmem:[#allocation8 + $0x218] sm:$0xff]  ;;  %v1325_v56 = vld [vmem:[#allocation8 + $0x828] sm:$0xff] }
 0x1bf   :  { %v1319_v25 = vld [vmem:[#allocation8 + $0x7f8] sm:$0xff] }
 0x1c0   :  { %v1574_v31 = vld [vmem:[#allocation8 + $0x918] sm:$0xff] }
 0x1c1   :  { %2468 = vmatpush1.bf16.msra.mxu1 %v2467_v61  ;;  %2532 = vmatpush1.bf16.msra.mxu0 %v2531_v47  ;;  %v2487_v61 = vpack.c.bf16 %v641_v40, %v635_v54  ;;  %v2615_v47 = vpack.c.bf16 %v1264_v6, %v1258_v3  ;;  %v701_v54 = vld [vmem:[#allocation8 + $0x210] sm:$0xff]  ;;  %v2505_v40 = vpack.c.bf16 %v702_v27, %v696_v11  ;;  %v1324_v3 = vld [vmem:[#allocation8 + $0x820] sm:$0xff]  ;;  %v708_v6 = vld [vmem:[#allocation8 + $0x248] sm:$0xff] }
 0x1c2   :  { %2470 = vmatprep.subr.bf16.mxu1 %v2469_v49  ;;  %2534 = vmatprep.subr.bf16.mxu0 %v2533_v17  ;;  %v2489_v49 = vpack.c.bf16 %v654_v52, %v648_v36  ;;  %v2617_v17 = vpack.c.bf16 %v1277_v43, %v1271_v1  ;;  %v714_v36 = vld [vmem:[#allocation8 + $0x278] sm:$0xff]  ;;  %v1337_v1 = vld [vmem:[#allocation8 + $0x888] sm:$0xff] }
 0x1c3   :  { %v1331_v52 = vld [vmem:[#allocation8 + $0x858] sm:$0xff]  ;;  %v664_v11 = vld [vmem:[#allocation8 + $0xe8] sm:$0xff] }
 0x1c4   :  { %v658_v7 = vld [vmem:[#allocation8 + $0xb8] sm:$0xff] }
 0x1c5   :  { %2472 = vmatpush1.bf16.msra.mxu1 %v2471_v59  ;;  %2536 = vmatpush1.bf16.msra.mxu0 %v2535_v2  ;;  %v2491_v59 = vpack.c.bf16 %v653_v44, %v647_v23  ;;  %v2619_v2 = vpack.c.bf16 %v1276_v33, %v1270_v35  ;;  %v713_v23 = vld [vmem:[#allocation8 + $0x270] sm:$0xff]  ;;  %v2509_v44 = vpack.c.bf16 %v714_v36, %v708_v6  ;;  %v1336_v35 = vld [vmem:[#allocation8 + $0x880] sm:$0xff]  ;;  %v720_v33 = vld [vmem:[#allocation8 + $0x2a8] sm:$0xff] }
 0x1c6   :  { %2474 = vmatprep.subr.bf16.mxu1 %v2473_v8  ;;  %2538 = vmatprep.subr.bf16.mxu0 %v2537_v15  ;;  %v2493_v8 = vpack.c.bf16 %v666_v57, %v660_v53  ;;  %v2621_v15 = vpack.c.bf16 %v1289_v62, %v1283_v41  ;;  %v726_v53 = vld [vmem:[#allocation8 + $0x2d8] sm:$0xff]  ;;  %v1349_v41 = vld [vmem:[#allocation8 + $0x8e8] sm:$0xff] }
 0x1c7   :  { %v1343_v57 = vld [vmem:[#allocation8 + $0x8b8] sm:$0xff] }
 0x1c8   :  { %v1586_v22 = vld [vmem:[#allocation8 + $0x978] sm:$0xff] }
 0x1c9   :  { %2476 = vmatpush1.bf16.msra.mxu1 %v2475_v20  ;;  %2540 = vmatpush1.bf16.msra.mxu0 %v2539_v9  ;;  %v2623_v20 = vpack.c.bf16 %v1288_v5, %v1282_v14  ;;  %v671_v9 = vld [vmem:[#allocation8 + $0x120] sm:$0xff]  ;;  %v640_v5 = vld [vmem:[#allocation8 + $0x28] sm:$0xff]  ;;  %v670_v27 = vld [vmem:[#allocation8 + $0x118] sm:$0xff] }
 0x1ca   :  { %2478 = vmatprep.subr.bf16.mxu1 %v2477_v28  ;;  %2542 = vmatprep.subr.bf16.mxu0 %v2541_v32  ;;  %v2625_v28 = vpack.c.bf16 %v1301_v46, %v1295_v50  ;;  %v1294_v32 = vld [vmem:[#allocation8 + $0x730] sm:$0xff]  ;;  %v2499_v19 = vpack.c.bf16 %v677_v26, %v671_v9  ;;  %v1348_v14 = vld [vmem:[#allocation8 + $0x8e0] sm:$0xff]  ;;  %v1580_v50 = vld [vmem:[#allocation8 + $0x948] sm:$0xff]  ;;  %v2549_v26 = vpack.c.bf16 %v646_v60, %v640_v5 }
 0x1cb   :  { %v645_v9 = vld [vmem:[#allocation8 + $0x50] sm:$0xff]  ;;  %v682_v6 = vld [vmem:[#allocation8 + $0x178] sm:$0xff] }
 0x1cc   :  { %v1610_v36 = vld [vmem:[#allocation8 + $0xa38] sm:$0xff] }
 0x1cd   :  { %2480 = vmatpush1.bf16.msra.mxu1 %v2479_v12  ;;  %2544 = vmatpush1.bf16.msra.mxu0 %v2543_v34  ;;  %v2627_v12 = vpack.c.bf16 %v1300_v16, %v1294_v32  ;;  %v683_v34 = vld [vmem:[#allocation8 + $0x180] sm:$0xff]  ;;  %v652_v16 = vld [vmem:[#allocation8 + $0x88] sm:$0xff]  ;;  %v706_v5 = vld [vmem:[#allocation8 + $0x238] sm:$0xff] }
 0x1ce   :  { %2482 = vmatprep.subr.bf16.mxu1 %v2481_v24  ;;  %2546 = vmatprep.subr.bf16.mxu0 %v2545_v13  ;;  %v2629_v24 = vpack.c.bf16 %v1313_v21, %v1307_v48  ;;  %v1306_v13 = vld [vmem:[#allocation8 + $0x790] sm:$0xff]  ;;  %v2503_v37 = vpack.c.bf16 %v689_v38, %v683_v34  ;;  %v1579_v32 = vld [vmem:[#allocation8 + $0x940] sm:$0xff]  ;;  %v1592_v48 = vld [vmem:[#allocation8 + $0x9a8] sm:$0xff]  ;;  %v3574_v38 = vmax.f32 %v3558_v29, 0.0 }
 0x1cf   :  { %v657_v34 = vld [vmem:[#allocation8 + $0xb0] sm:$0xff]  ;;  %v663_v29 = vld [vmem:[#allocation8 + $0xe0] sm:$0xff]  ;;  %v1634_v60 = vld [vmem:[#allocation8 + $0xaf8] sm:$0xff] }
 0x1d1   :  { %2484 = vmatpush1.bf16.msra.mxu1 %v2483_v63  ;;  %2548 = vmatpush1.bf16.msra.mxu0 %v2547_v0  ;;  %v2631_v63 = vpack.c.bf16 %v1312_v39, %v1306_v13  ;;  %v695_v0 = vld [vmem:[#allocation8 + $0x1e0] sm:$0xff]  ;;  %v1585_v13 = vld [vmem:[#allocation8 + $0x970] sm:$0xff] }
 0x1d2   :  { %2486 = vmatprep.subr.bf16.mxu1 %v2485_v51  ;;  %2614 = vmatprep.subr.bf16.mxu0 %v2613_v45  ;;  %v2633_v51 = vpack.c.bf16 %v1325_v56, %v1319_v25  ;;  %v1318_v45 = vld [vmem:[#allocation8 + $0x7f0] sm:$0xff]  ;;  %v2507_v43 = vpack.c.bf16 %v701_v54, %v695_v0  ;;  %v1591_v39 = vld [vmem:[#allocation8 + $0x9a0] sm:$0xff]  ;;  %v1598_v25 = vld [vmem:[#allocation8 + $0x9d8] sm:$0xff]  ;;  %v2557_v54 = vpack.c.bf16 %v670_v27, %v664_v11 }
 0x1d3   :  { %v1604_v56 = vld [vmem:[#allocation8 + $0xa08] sm:$0xff]  ;;  %v669_v0 = vld [vmem:[#allocation8 + $0x110] sm:$0xff]  ;;  %v730_v11 = vld [vmem:[#allocation8 + $0x2f8] sm:$0xff] }
 0x1d4   :  { %1037 = vmatmul.mubr.f32.vlgmr.msra.gmra.mrb[2].mxu1 %v3563_v30  ;;  %1179 = vmatmul.mubr.f32.vlgmr.msra.gmra.mrb[2].mxu0 %v3560_v18  ;;  %v2495_v30 = vpack.c.bf16 %v665_v10, %v659_v4  ;;  %v725_v4 = vld [vmem:[#allocation8 + $0x2d0] sm:$0xff]  ;;  %v2513_v10 = vpack.c.bf16 %v726_v53, %v720_v33  ;;  %v694_v33 = vld [vmem:[#allocation8 + $0x1d8] sm:$0xff] }
 0x1d5   :  { %2488 = vmatpush1.bf16.msra.mxu1 %v2487_v61  ;;  %2616 = vmatpush1.bf16.msra.mxu0 %v2615_v47  ;;  %v2635_v61 = vpack.c.bf16 %v1324_v3, %v1318_v45  ;;  %v707_v47 = vld [vmem:[#allocation8 + $0x240] sm:$0xff]  ;;  %v676_v3 = vld [vmem:[#allocation8 + $0x148] sm:$0xff]  ;;  %v1622_v53 = vld [vmem:[#allocation8 + $0xa98] sm:$0xff] }
 0x1d6   :  { %2490 = vmatprep.subr.bf16.mxu1 %v2489_v49  ;;  %2618 = vmatprep.subr.bf16.mxu0 %v2617_v17  ;;  %v2637_v49 = vpack.c.bf16 %v1337_v1, %v1331_v52  ;;  %v1330_v17 = vld [vmem:[#allocation8 + $0x850] sm:$0xff]  ;;  %v2511_v62 = vpack.c.bf16 %v713_v23, %v707_v47  ;;  %v1603_v45 = vld [vmem:[#allocation8 + $0xa00] sm:$0xff]  ;;  %v1616_v52 = vld [vmem:[#allocation8 + $0xa68] sm:$0xff]  ;;  %v2559_v1 = vpack.c.bf16 %v669_v0, %v663_v29 }
 0x1d7   :  { %1107 = vmatprep.mubr.f32.mxu1 %v3097_v55  ;;  %1487 = vmatprep.mubr.f32.mxu0 %v3097_v55  ;;  %v681_v47 = vld [vmem:[#allocation8 + $0x170] sm:$0xff]  ;;  %v2561_v23 = vpack.c.bf16 %v682_v6, %v676_v3  ;;  %v1658_v27 = vld [vmem:[#allocation8 + $0xbb8] sm:$0xff] }
 0x1d8   :  { %v1263_v3 = vld [vmem:[#allocation8 + $0x638] sm:$0xff] }
 0x1d9   :  { %2492 = vmatpush1.bf16.msra.mxu1 %v2491_v59  ;;  %2620 = vmatpush1.bf16.msra.mxu0 %v2619_v2  ;;  %v2639_v59 = vpack.c.bf16 %v1336_v35, %v1330_v17  ;;  %v719_v2 = vld [vmem:[#allocation8 + $0x2a0] sm:$0xff]  ;;  %v688_v35 = vld [vmem:[#allocation8 + $0x1a8] sm:$0xff] }
 0x1da   :  { %2494 = vmatprep.subr.bf16.mxu1 %v2493_v8  ;;  %2622 = vmatprep.subr.bf16.mxu0 %v2621_v15  ;;  %v2641_v8 = vpack.c.bf16 %v1349_v41, %v1343_v57  ;;  %v1342_v15 = vld [vmem:[#allocation8 + $0x8b0] sm:$0xff]  ;;  %v2515_v46 = vpack.c.bf16 %v725_v4, %v719_v2  ;;  %v1615_v17 = vld [vmem:[#allocation8 + $0xa60] sm:$0xff]  ;;  %v1628_v57 = vld [vmem:[#allocation8 + $0xac8] sm:$0xff]  ;;  %v2565_v4 = vpack.c.bf16 %v694_v33, %v688_v35 }
 0x1db   :  { %v693_v2 = vld [vmem:[#allocation8 + $0x1d0] sm:$0xff]  ;;  %v1281_v33 = vld [vmem:[#allocation8 + $0x6c8] sm:$0xff] }
 0x1dc   :  { %v1274_v35 = vld [vmem:[#allocation8 + $0x690] sm:$0xff] }
 0x1dd   :  { %2496 = vmatpush1.bf16.msra.mxu1 %v2495_v30  ;;  %2624 = vmatpush1.bf16.msra.mxu0 %v2623_v20  ;;  %v2643_v30 = vpack.c.bf16 %v1348_v14, %v1342_v15  ;;  %v639_v20 = vld [vmem:[#allocation8 + $0x20] sm:$0xff]  ;;  %v700_v14 = vld [vmem:[#allocation8 + $0x208] sm:$0xff] }
 0x1de   :  { %2498 = vmatprep.subr.bf16.mxu1 %v2497_v58  ;;  %2626 = vmatprep.subr.bf16.mxu0 %v2625_v28  ;;  %v2709_v58 = vpack.c.bf16 %v1580_v50, %v1574_v31  ;;  %v1573_v28 = vld [vmem:[#allocation8 + $0x910] sm:$0xff]  ;;  %v2551_v21 = vpack.c.bf16 %v645_v9, %v639_v20  ;;  %v1627_v15 = vld [vmem:[#allocation8 + $0xac0] sm:$0xff]  ;;  %v1640_v31 = vld [vmem:[#allocation8 + $0xb28] sm:$0xff]  ;;  %v2569_v9 = vpack.c.bf16 %v706_v5, %v700_v14 }
 0x1df   :  { %v705_v20 = vld [vmem:[#allocation8 + $0x230] sm:$0xff]  ;;  %v1305_v5 = vld [vmem:[#allocation8 + $0x788] sm:$0xff] }
 0x1e0   :  { %v1298_v14 = vld [vmem:[#allocation8 + $0x750] sm:$0xff] }
 0x1e1   :  { %2500 = vmatpush1.bf16.msra.mxu1 %v2499_v19  ;;  %2628 = vmatpush1.bf16.msra.mxu0 %v2627_v12  ;;  %v2711_v19 = vpack.c.bf16 %v1579_v32, %v1573_v28  ;;  %v651_v12 = vld [vmem:[#allocation8 + $0x80] sm:$0xff]  ;;  %v712_v32 = vld [vmem:[#allocation8 + $0x268] sm:$0xff] }
 0x1e2   :  { %2502 = vmatprep.subr.bf16.mxu1 %v2501_v42  ;;  %2630 = vmatprep.subr.bf16.mxu0 %v2629_v24  ;;  %v2553_v42 = vpack.c.bf16 %v658_v7, %v652_v16  ;;  %v2713_v24 = vpack.c.bf16 %v1592_v48, %v1586_v22  ;;  %v1639_v28 = vld [vmem:[#allocation8 + $0xb20] sm:$0xff]  ;;  %v718_v16 = vld [vmem:[#allocation8 + $0x298] sm:$0xff]  ;;  %v1652_v22 = vld [vmem:[#allocation8 + $0xb88] sm:$0xff] }
 0x1e3   :  { %v1646_v7 = vld [vmem:[#allocation8 + $0xb58] sm:$0xff] }
 0x1e5   :  { %2504 = vmatpush1.bf16.msra.mxu1 %v2503_v37  ;;  %2632 = vmatpush1.bf16.msra.mxu0 %v2631_v63  ;;  %v2555_v37 = vpack.c.bf16 %v657_v34, %v651_v12  ;;  %v2715_v63 = vpack.c.bf16 %v1591_v39, %v1585_v13  ;;  %v717_v12 = vld [vmem:[#allocation8 + $0x290] sm:$0xff]  ;;  %v2573_v34 = vpack.c.bf16 %v718_v16, %v712_v32  ;;  %v1651_v13 = vld [vmem:[#allocation8 + $0xb80] sm:$0xff]  ;;  %v724_v39 = vld [vmem:[#allocation8 + $0x2c8] sm:$0xff] }
 0x1e6   :  { %2506 = vmatprep.subr.bf16.mxu1 %v2505_v40  ;;  %2634 = vmatprep.subr.bf16.mxu0 %v2633_v51  ;;  %v2717_v40 = vpack.c.bf16 %v1604_v56, %v1598_v25  ;;  %v1597_v51 = vld [vmem:[#allocation8 + $0x9d0] sm:$0xff]  ;;  %v1664_v25 = vld [vmem:[#allocation8 + $0xbe8] sm:$0xff]  ;;  %v2577_v29 = vpack.c.bf16 %v730_v11, %v724_v39  ;;  %v1335_v16 = vld [vmem:[#allocation8 + $0x878] sm:$0xff] }
 0x1e7   :  { %v2737_v0 = vpack.c.bf16 %v1664_v25, %v1658_v27  ;;  %v1329_v32 = vld [vmem:[#allocation8 + $0x848] sm:$0xff]  ;;  %v1267_v11 = vld [vmem:[#allocation8 + $0x658] sm:$0xff] }
 0x1e8   :  { %v1261_v39 = vld [vmem:[#allocation8 + $0x628] sm:$0xff] }
 0x1e9   :  { %2508 = vmatpush1.bf16.msra.mxu1 %v2507_v43  ;;  %2636 = vmatpush1.bf16.msra.mxu0 %v2635_v61  ;;  %v2719_v43 = vpack.c.bf16 %v1603_v45, %v1597_v51  ;;  %v675_v61 = vld [vmem:[#allocation8 + $0x140] sm:$0xff]  ;;  %v1257_v45 = vld [vmem:[#allocation8 + $0x608] sm:$0xff]  ;;  %v2645_v25 = vpack.c.bf16 %v1267_v11, %v1261_v39  ;;  %v1602_v39 = vld [vmem:[#allocation8 + $0x9f8] sm:$0xff] }
 0x1ea   :  { %2510 = vmatprep.subr.bf16.mxu1 %v2509_v44  ;;  %2638 = vmatprep.subr.bf16.mxu0 %v2637_v49  ;;  %v2721_v44 = vpack.c.bf16 %v1616_v52, %v1610_v36  ;;  %v1609_v49 = vld [vmem:[#allocation8 + $0xa30] sm:$0xff]  ;;  %v2563_v41 = vpack.c.bf16 %v681_v47, %v675_v61  ;;  %v1663_v51 = vld [vmem:[#allocation8 + $0xbe0] sm:$0xff]  ;;  %v2581_v52 = vpack.c.bf16 %v1263_v3, %v1257_v45  ;;  %v1269_v61 = vld [vmem:[#allocation8 + $0x668] sm:$0xff] }
 0x1eb   :  { %v1275_v47 = vld [vmem:[#allocation8 + $0x698] sm:$0xff]  ;;  %v1285_v45 = vld [vmem:[#allocation8 + $0x6e8] sm:$0xff] }
 0x1ec   :  { %v1291_v3 = vld [vmem:[#allocation8 + $0x718] sm:$0xff] }
 0x1ed   :  { %2512 = vmatpush1.bf16.msra.mxu1 %v2511_v62  ;;  %2640 = vmatpush1.bf16.msra.mxu0 %v2639_v59  ;;  %v2723_v62 = vpack.c.bf16 %v1615_v17, %v1609_v49  ;;  %v687_v59 = vld [vmem:[#allocation8 + $0x1a0] sm:$0xff]  ;;  %v2585_v49 = vpack.c.bf16 %v1275_v47, %v1269_v61  ;;  %v1303_v61 = vld [vmem:[#allocation8 + $0x778] sm:$0xff] }
 0x1ee   :  { %2514 = vmatprep.subr.bf16.mxu1 %v2513_v10  ;;  %2642 = vmatprep.subr.bf16.mxu0 %v2641_v8  ;;  %v2725_v10 = vpack.c.bf16 %v1628_v57, %v1622_v53  ;;  %v1621_v8 = vld [vmem:[#allocation8 + $0xa90] sm:$0xff]  ;;  %v2567_v50 = vpack.c.bf16 %v693_v2, %v687_v59  ;;  %v1268_v17 = vld [vmem:[#allocation8 + $0x660] sm:$0xff]  ;;  %v1287_v53 = vld [vmem:[#allocation8 + $0x6f8] sm:$0xff] }
 0x1ef   :  { %v2587_v57 = vpack.c.bf16 %v1274_v35, %v1268_v17  ;;  %v1286_v59 = vld [vmem:[#allocation8 + $0x6f0] sm:$0xff]  ;;  %v1293_v2 = vld [vmem:[#allocation8 + $0x728] sm:$0xff] }
 0x1f0   :  { %v1302_v17 = vld [vmem:[#allocation8 + $0x770] sm:$0xff]  ;;  %v1309_v35 = vld [vmem:[#allocation8 + $0x7a8] sm:$0xff] }
 0x1f1   :  { %2516 = vmatpush1.bf16.msra.mxu1 %v2515_v46  ;;  %2644 = vmatpush1.bf16.msra.mxu0 %v2643_v30  ;;  %v2727_v46 = vpack.c.bf16 %v1627_v15, %v1621_v8  ;;  %v699_v30 = vld [vmem:[#allocation8 + $0x200] sm:$0xff] }
 0x1f2   :  { %2550 = vmatprep.subr.bf16.mxu1 %v2549_v26  ;;  %2710 = vmatprep.subr.bf16.mxu0 %v2709_v58  ;;  %v2729_v26 = vpack.c.bf16 %v1640_v31, %v1634_v60  ;;  %v1633_v58 = vld [vmem:[#allocation8 + $0xaf0] sm:$0xff]  ;;  %v2571_v48 = vpack.c.bf16 %v705_v20, %v699_v30  ;;  %v1292_v15 = vld [vmem:[#allocation8 + $0x720] sm:$0xff]  ;;  %v1317_v30 = vld [vmem:[#allocation8 + $0x7e8] sm:$0xff] }
 0x1f3   :  { %v2595_v60 = vpack.c.bf16 %v1298_v14, %v1292_v15  ;;  %v1323_v20 = vld [vmem:[#allocation8 + $0x818] sm:$0xff]  ;;  %v1326_v15 = vld [vmem:[#allocation8 + $0x830] sm:$0xff]  ;;  %v1333_v14 = vld [vmem:[#allocation8 + $0x868] sm:$0xff] }
 0x1f4   :  { %1108 = vmatmul.mubr.f32.vlgmr.msra.gmra.mrb[0].mxu1 %v3560_v18  ;;  %1488 = vmatmul.mubr.f32.vlgmr.msra.gmra.mrb[2].mxu0 %v3574_v38 }
 0x1f5   :  { %2552 = vmatpush1.bf16.msra.mxu1 %v2551_v21  ;;  %2712 = vmatpush1.bf16.msra.mxu0 %v2711_v19  ;;  %v2731_v21 = vpack.c.bf16 %v1639_v28, %v1633_v58  ;;  %v711_v19 = vld [vmem:[#allocation8 + $0x260] sm:$0xff]  ;;  %v1322_v28 = vld [vmem:[#allocation8 + $0x810] sm:$0xff] }
 0x1f6   :  { %2554 = vmatprep.subr.bf16.mxu1 %v2553_v42  ;;  %2714 = vmatprep.subr.bf16.mxu0 %v2713_v24  ;;  %v2733_v42 = vpack.c.bf16 %v1652_v22, %v1646_v7  ;;  %v1645_v24 = vld [vmem:[#allocation8 + $0xb50] sm:$0xff]  ;;  %v2575_v56 = vpack.c.bf16 %v717_v12, %v711_v19  ;;  %v1316_v58 = vld [vmem:[#allocation8 + $0x7e0] sm:$0xff]  ;;  %v2605_v22 = vpack.c.bf16 %v1335_v16, %v1329_v32  ;;  %v1341_v19 = vld [vmem:[#allocation8 + $0x8a8] sm:$0xff] }
 0x1f7   :  { %1249 = vmatprep.mubr.f32.mxu1 %v3097_v55  ;;  %1805 = vmatprep.mubr.f32.mxu0 %v3097_v55  ;;  %v2603_v7 = vpack.c.bf16 %v1322_v28, %v1316_v58  ;;  %v1347_v12 = vld [vmem:[#allocation8 + $0x8d8] sm:$0xff]  ;;  %v1350_v58 = vld [vmem:[#allocation8 + $0x8f0] sm:$0xff]  ;;  %v1572_v28 = vld [vmem:[#allocation8 + $0x908] sm:$0xff] }
 0x1f8   :  { %v1578_v32 = vld [vmem:[#allocation8 + $0x938] sm:$0xff] }
 0x1f9   :  { %2556 = vmatpush1.bf16.msra.mxu1 %v2555_v37  ;;  %2716 = vmatpush1.bf16.msra.mxu0 %v2715_v63  ;;  %v2735_v37 = vpack.c.bf16 %v1651_v13, %v1645_v24  ;;  %v723_v63 = vld [vmem:[#allocation8 + $0x2c0] sm:$0xff]  ;;  %v1346_v13 = vld [vmem:[#allocation8 + $0x8d0] sm:$0xff] }
 0x1fa   :  { %2558 = vmatprep.subr.bf16.mxu1 %v2557_v54  ;;  %2718 = vmatprep.subr.bf16.mxu0 %v2717_v40  ;;  %v729_v54 = vld [vmem:[#allocation8 + $0x2f0] sm:$0xff]  ;;  %v1340_v24 = vld [vmem:[#allocation8 + $0x8a0] sm:$0xff] }
 0x1fb   :  { %v1657_v40 = vld [vmem:[#allocation8 + $0xbb0] sm:$0xff]  ;;  %v2579_v6 = vpack.c.bf16 %v729_v54, %v723_v63  ;;  %v2611_v27 = vpack.c.bf16 %v1346_v13, %v1340_v24  ;;  %v1273_v63 = vld [vmem:[#allocation8 + $0x688] sm:$0xff] }
 0x1fc   :  { %v2739_v36 = vpack.c.bf16 %v1663_v51, %v1657_v40  ;;  %v1272_v40 = vld [vmem:[#allocation8 + $0x680] sm:$0xff]  ;;  %v1278_v51 = vld [vmem:[#allocation8 + $0x6b0] sm:$0xff]  ;;  %v1596_v13 = vld [vmem:[#allocation8 + $0x9c8] sm:$0xff] }
 0x1fd   :  { %2560 = vmatpush1.bf16.msra.mxu1 %v2559_v1  ;;  %2720 = vmatpush1.bf16.msra.mxu0 %v2719_v43  ;;  %v1256_v1 = vld [vmem:[#allocation8 + $0x600] sm:$0xff]  ;;  %v1262_v43 = vld [vmem:[#allocation8 + $0x630] sm:$0xff] }
 0x1fe   :  { %2562 = vmatprep.subr.bf16.mxu1 %v2561_v23  ;;  %2722 = vmatprep.subr.bf16.mxu0 %v2721_v44  ;;  %v2583_v23 = vpack.c.bf16 %v1262_v43, %v1256_v1  ;;  %v3581_v44 = vrot.slane %v3574_v38, 4  ;;  %v1290_v1 = vld [vmem:[#allocation8 + $0x710] sm:$0xff]  ;;  %v1297_v43 = vld [vmem:[#allocation8 + $0x748] sm:$0xff] }
 0x1ff   :  { %v1589_v24 = vld [vmem:[#allocation8 + $0x990] sm:$0xff] }
 0x201   :  { %2564 = vmatpush1.bf16.msra.mxu1 %v2563_v41  ;;  %2724 = vmatpush1.bf16.msra.mxu0 %v2723_v62  ;;  %v2589_v41 = vpack.c.bf16 %v1287_v53, %v1281_v33  ;;  %v1280_v62 = vld [vmem:[#allocation8 + $0x6c0] sm:$0xff]  ;;  %v1315_v33 = vld [vmem:[#allocation8 + $0x7d8] sm:$0xff] }
 0x202   :  { %2566 = vmatprep.subr.bf16.mxu1 %v2565_v4  ;;  %2726 = vmatprep.subr.bf16.mxu0 %v2725_v10  ;;  %v1299_v4 = vld [vmem:[#allocation8 + $0x758] sm:$0xff]  ;;  %v2591_v10 = vpack.c.bf16 %v1286_v59, %v1280_v62  ;;  %v1314_v62 = vld [vmem:[#allocation8 + $0x7d0] sm:$0xff]  ;;  %v1321_v59 = vld [vmem:[#allocation8 + $0x808] sm:$0xff] }
 0x203   :  { %v2593_v8 = vpack.c.bf16 %v1299_v4, %v1293_v2  ;;  %v1327_v2 = vld [vmem:[#allocation8 + $0x838] sm:$0xff] }
 0x205   :  { %2568 = vmatpush1.bf16.msra.mxu1 %v2567_v50  ;;  %2728 = vmatpush1.bf16.msra.mxu0 %v2727_v46  ;;  %v1304_v50 = vld [vmem:[#allocation8 + $0x780] sm:$0xff]  ;;  %v1310_v46 = vld [vmem:[#allocation8 + $0x7b0] sm:$0xff] }
 0x206   :  { %2570 = vmatprep.subr.bf16.mxu1 %v2569_v9  ;;  %2730 = vmatprep.subr.bf16.mxu0 %v2729_v26  ;;  %v2599_v9 = vpack.c.bf16 %v1310_v46, %v1304_v50  ;;  %v2601_v26 = vpack.c.bf16 %v1323_v20, %v1317_v30  ;;  %v1338_v50 = vld [vmem:[#allocation8 + $0x890] sm:$0xff]  ;;  %v1345_v46 = vld [vmem:[#allocation8 + $0x8c8] sm:$0xff]  ;;  %v1351_v30 = vld [vmem:[#allocation8 + $0x8f8] sm:$0xff] }
 0x209   :  { %2572 = vmatpush1.bf16.msra.mxu1 %v2571_v48  ;;  %2732 = vmatpush1.bf16.msra.mxu0 %v2731_v21  ;;  %v1328_v48 = vld [vmem:[#allocation8 + $0x840] sm:$0xff]  ;;  %v1334_v21 = vld [vmem:[#allocation8 + $0x870] sm:$0xff] }
 0x20a   :  { %2574 = vmatprep.subr.bf16.mxu1 %v2573_v34  ;;  %2734 = vmatprep.subr.bf16.mxu0 %v2733_v42  ;;  %v2607_v34 = vpack.c.bf16 %v1334_v21, %v1328_v48  ;;  %v2609_v42 = vpack.c.bf16 %v1347_v12, %v1341_v19  ;;  %v1577_v48 = vld [vmem:[#allocation8 + $0x930] sm:$0xff]  ;;  %v1584_v21 = vld [vmem:[#allocation8 + $0x968] sm:$0xff]  ;;  %v1590_v19 = vld [vmem:[#allocation8 + $0x998] sm:$0xff] }
 0x20d   :  { %2576 = vmatpush1.bf16.msra.mxu1 %v2575_v56  ;;  %2736 = vmatpush1.bf16.msra.mxu0 %v2735_v37  ;;  %v1260_v56 = vld [vmem:[#allocation8 + $0x620] sm:$0xff]  ;;  %v1266_v37 = vld [vmem:[#allocation8 + $0x650] sm:$0xff] }
 0x20e   :  { %2578 = vmatprep.subr.bf16.mxu1 %v2577_v29  ;;  %2738 = vmatprep.subr.bf16.mxu0 %v2737_v0  ;;  %v1279_v29 = vld [vmem:[#allocation8 + $0x6b8] sm:$0xff]  ;;  %v2647_v0 = vpack.c.bf16 %v1266_v37, %v1260_v56  ;;  %v1601_v56 = vld [vmem:[#allocation8 + $0x9f0] sm:$0xff]  ;;  %v1608_v37 = vld [vmem:[#allocation8 + $0xa28] sm:$0xff] }
 0x20f   :  { %v2649_v54 = vpack.c.bf16 %v1279_v29, %v1273_v63  ;;  %v1614_v63 = vld [vmem:[#allocation8 + $0xa58] sm:$0xff] }
 0x211   :  { %2580 = vmatpush1.bf16.msra.mxu1 %v2579_v6  ;;  %2740 = vmatpush1.bf16.msra.mxu0 %v2739_v36  ;;  %v2651_v6 = vpack.c.bf16 %v1278_v51, %v1272_v40  ;;  %v2653_v36 = vpack.c.bf16 %v1291_v3, %v1285_v45  ;;  %v1613_v40 = vld [vmem:[#allocation8 + $0xa50] sm:$0xff]  ;;  %v1620_v51 = vld [vmem:[#allocation8 + $0xa88] sm:$0xff]  ;;  %v1626_v45 = vld [vmem:[#allocation8 + $0xab8] sm:$0xff] }
 0x212   :  { %2582 = vmatprep.subr.bf16.mxu1 %v2581_v52  ;;  %v1284_v52 = vld [vmem:[#allocation8 + $0x6e0] sm:$0xff]  ;;  %v2693_v3 = vpack.c.bf16 %v1626_v45, %v1620_v51  ;;  %v1958_v45 = vld [vmem:[#allocation11 + $0xc8] sm:$0xff] }
 0x213   :  { %v2655_v47 = vpack.c.bf16 %v1290_v1, %v1284_v52  ;;  %v1632_v52 = vld [vmem:[#allocation8 + $0xae8] sm:$0xff]  ;;  %v1638_v1 = vld [vmem:[#allocation8 + $0xb18] sm:$0xff] }
 0x214   :  { %1250 = vmatmul.mubr.f32.vlgmr.msra.gmra.mrb[2].mxu1 %v3560_v18  ;;  %1806 = vmatmul.mubr.f32.vlgmr.msra.gmra.mrb[2].mxu0 %v3581_v44  ;;  %v1311_v18 = vld [vmem:[#allocation8 + $0x7b8] sm:$0xff]  ;;  %v1957_v51 = vld [vmem:[#allocation11 + $0xc0] sm:$0xff] }
 0x215   :  { %2584 = vmatpush1.bf16.msra.mxu1 %v2583_v23  ;;  %1416 = vmatprep.mubr.f32.mxu1 %v3097_v55  ;;  %v2597_v31 = vpack.c.bf16 %v1311_v18, %v1305_v5  ;;  %v2657_v23 = vpack.c.bf16 %v1303_v61, %v1297_v43  ;;  %v1339_v5 = vld [vmem:[#allocation8 + $0x898] sm:$0xff]  ;;  %v2697_v61 = vpack.c.bf16 %v1638_v1, %v1632_v52 }
 0x216   :  { %2586 = vmatprep.subr.bf16.mxu1 %v2585_v49  ;;  %v1296_v49 = vld [vmem:[#allocation8 + $0x740] sm:$0xff]  ;;  %v1618_v52 = vld [vmem:[#allocation8 + $0xa78] sm:$0xff] }
 0x217   :  { %v2659_v53 = vpack.c.bf16 %v1302_v17, %v1296_v49  ;;  %v1644_v49 = vld [vmem:[#allocation8 + $0xb48] sm:$0xff]  ;;  %v1650_v17 = vld [vmem:[#allocation8 + $0xb78] sm:$0xff] }
 0x219   :  { %2588 = vmatpush1.bf16.msra.mxu1 %v2587_v57  ;;  %v2661_v57 = vpack.c.bf16 %v1315_v33, %v1309_v35  ;;  %v2701_v33 = vpack.c.bf16 %v1650_v17, %v1644_v49  ;;  %v1959_v49 = vld [vmem:[#allocation11 + $0xd0] sm:$0xff]  ;;  %v1960_v17 = vld [vmem:[#allocation11 + $0xd8] sm:$0xff] }
 0x21a   :  { %2590 = vmatprep.subr.bf16.mxu1 %v2589_v41  ;;  %v1308_v41 = vld [vmem:[#allocation8 + $0x7a0] sm:$0xff] }
 0x21b   :  { %v2663_v4 = vpack.c.bf16 %v1314_v62, %v1308_v41  ;;  %v1656_v41 = vld [vmem:[#allocation8 + $0xba8] sm:$0xff]  ;;  %v1662_v62 = vld [vmem:[#allocation8 + $0xbd8] sm:$0xff] }
 0x21d   :  { %2592 = vmatpush1.bf16.msra.mxu1 %v2591_v10  ;;  %v2665_v10 = vpack.c.bf16 %v1327_v2, %v1321_v59  ;;  %v1655_v2 = vld [vmem:[#allocation8 + $0xba0] sm:$0xff] }
 0x21e   :  { %2594 = vmatprep.subr.bf16.mxu1 %v2593_v8  ;;  %v1320_v8 = vld [vmem:[#allocation8 + $0x800] sm:$0xff] }
 0x21f   :  { %v2667_v18 = vpack.c.bf16 %v1326_v15, %v1320_v8  ;;  %v1576_v8 = vld [vmem:[#allocation8 + $0x928] sm:$0xff]  ;;  %v1582_v15 = vld [vmem:[#allocation8 + $0x958] sm:$0xff] }
 0x221   :  { %2596 = vmatpush1.bf16.msra.mxu1 %v2595_v60  ;;  %v2669_v60 = vpack.c.bf16 %v1339_v5, %v1333_v14  ;;  %v1949_v14 = vld [vmem:[#allocation11 + $0x80] sm:$0xff]  ;;  %v1950_v5 = vld [vmem:[#allocation11 + $0x88] sm:$0xff] }
 0x222   :  { %2598 = vmatprep.subr.bf16.mxu1 %v2597_v31  ;;  %v1332_v31 = vld [vmem:[#allocation8 + $0x860] sm:$0xff] }
 0x223   :  { %v2671_v20 = vpack.c.bf16 %v1338_v50, %v1332_v31  ;;  %v1934_v31 = vld [vmem:[#allocation11 + $0x8] sm:$0xff]  ;;  %v1951_v50 = vld [vmem:[#allocation11 + $0x90] sm:$0xff] }
 0x225   :  { %2600 = vmatpush1.bf16.msra.mxu1 %v2599_v9  ;;  %v2673_v9 = vpack.c.bf16 %v1351_v30, %v1345_v46  ;;  %v1952_v46 = vld [vmem:[#allocation11 + $0x98] sm:$0xff] }
 0x226   :  { %2602 = vmatprep.subr.bf16.mxu1 %v2601_v26  ;;  %v1344_v26 = vld [vmem:[#allocation8 + $0x8c0] sm:$0xff] }
 0x227   :  { %v2675_v16 = vpack.c.bf16 %v1350_v58, %v1344_v26  ;;  %v1935_v26 = vld [vmem:[#allocation11 + $0x10] sm:$0xff]  ;;  %v1936_v58 = vld [vmem:[#allocation11 + $0x18] sm:$0xff] }
 0x229   :  { %2604 = vmatpush1.bf16.msra.mxu1 %v2603_v7  ;;  %v2677_v7 = vpack.c.bf16 %v1578_v32, %v1572_v28  ;;  %v1953_v28 = vld [vmem:[#allocation11 + $0xa0] sm:$0xff]  ;;  %v2741_v32 = vpack.c.bf16 %v1582_v15, %v1576_v8  ;;  %v1962_v8 = vld [vmem:[#allocation11 + $0xe8] sm:$0xff] }
 0x22a   :  { %2606 = vmatprep.subr.bf16.mxu1 %v2605_v22  ;;  %v1571_v22 = vld [vmem:[#allocation8 + $0x900] sm:$0xff] }
 0x22b   :  { %v2679_v12 = vpack.c.bf16 %v1577_v48, %v1571_v22  ;;  %v1954_v22 = vld [vmem:[#allocation11 + $0xa8] sm:$0xff] }
 0x22c   :  { %v1588_v48 = vld [vmem:[#allocation8 + $0x988] sm:$0xff] }
 0x22d   :  { %2608 = vmatpush1.bf16.msra.mxu1 %v2607_v34  ;;  %v2681_v34 = vpack.c.bf16 %v1590_v19, %v1584_v21  ;;  %v1594_v21 = vld [vmem:[#allocation8 + $0x9b8] sm:$0xff]  ;;  %v2779_v19 = vpack.c.bf16 %v1936_v58, %v1935_v26  ;;  %v1635_v26 = vld [vmem:[#allocation8 + $0xb00] sm:$0xff]  ;;  %v1641_v58 = vld [vmem:[#allocation8 + $0xb30] sm:$0xff] }
 0x22e   :  { %2610 = vmatprep.subr.bf16.mxu1 %v2609_v42  ;;  %v1583_v42 = vld [vmem:[#allocation8 + $0x960] sm:$0xff] }
 0x22f   :  { %v2683_v11 = vpack.c.bf16 %v1589_v24, %v1583_v42  ;;  %v1938_v42 = vld [vmem:[#allocation11 + $0x28] sm:$0xff] }
 0x231   :  { %2612 = vmatpush1.bf16.msra.mxu1 %v2611_v27  ;;  %v2685_v27 = vpack.c.bf16 %v1602_v39, %v1596_v13  ;;  %v1955_v13 = vld [vmem:[#allocation11 + $0xb0] sm:$0xff]  ;;  %v1956_v39 = vld [vmem:[#allocation11 + $0xb8] sm:$0xff] }
 0x232   :  { %2646 = vmatprep.subr.bf16.mxu1 %v2645_v25  ;;  %v1595_v25 = vld [vmem:[#allocation8 + $0x9c0] sm:$0xff] }
 0x233   :  { %v2687_v29 = vpack.c.bf16 %v1601_v56, %v1595_v25  ;;  %v1593_v25 = vld [vmem:[#allocation8 + $0x9b0] sm:$0xff]  ;;  %v1600_v56 = vld [vmem:[#allocation8 + $0x9e8] sm:$0xff] }
 0x234   :  { %1417 = vmatmul.mubr.f32.vlgmr.msra.gmra.mrb[0].mxu1 %v3574_v38 }
 0x235   :  { %2648 = vmatpush1.bf16.msra.mxu1 %v2647_v0  ;;  %1558 = vmatprep.mubr.f32.mxu1 %v3097_v55  ;;  %v2689_v0 = vpack.c.bf16 %v1614_v63, %v1608_v37  ;;  %v1606_v37 = vld [vmem:[#allocation8 + $0xa18] sm:$0xff] }
 0x236   :  { %2650 = vmatprep.subr.bf16.mxu1 %v2649_v54  ;;  %v1607_v54 = vld [vmem:[#allocation8 + $0xa20] sm:$0xff] }
 0x239   :  { %2652 = vmatpush1.bf16.msra.mxu1 %v2651_v6  ;;  %v1619_v6 = vld [vmem:[#allocation8 + $0xa80] sm:$0xff] }
 0x23a   :  { %2654 = vmatprep.subr.bf16.mxu1 %v2653_v36  ;;  %v1625_v36 = vld [vmem:[#allocation8 + $0xab0] sm:$0xff] }
 0x23b   :  { %v2695_v43 = vpack.c.bf16 %v1625_v36, %v1619_v6  ;;  %v1605_v6 = vld [vmem:[#allocation8 + $0xa10] sm:$0xff]  ;;  %v1612_v36 = vld [vmem:[#allocation8 + $0xa48] sm:$0xff] }
 0x23d   :  { %2656 = vmatpush1.bf16.msra.mxu1 %v2655_v47  ;;  %v1631_v47 = vld [vmem:[#allocation8 + $0xae0] sm:$0xff] }
 0x23e   :  { %2658 = vmatprep.subr.bf16.mxu1 %v2657_v23  ;;  %v1637_v23 = vld [vmem:[#allocation8 + $0xb10] sm:$0xff] }
 0x23f   :  { %v2699_v35 = vpack.c.bf16 %v1637_v23, %v1631_v47  ;;  %v1942_v47 = vld [vmem:[#allocation11 + $0x48] sm:$0xff] }
 0x241   :  { %2660 = vmatpush1.bf16.msra.mxu1 %v2659_v53  ;;  %v1643_v53 = vld [vmem:[#allocation8 + $0xb40] sm:$0xff] }
 0x242   :  { %2662 = vmatprep.subr.bf16.mxu1 %v2661_v57  ;;  %v1649_v57 = vld [vmem:[#allocation8 + $0xb70] sm:$0xff] }
 0x243   :  { %v2703_v59 = vpack.c.bf16 %v1649_v57, %v1643_v53  ;;  %v1624_v53 = vld [vmem:[#allocation8 + $0xaa8] sm:$0xff]  ;;  %v1630_v57 = vld [vmem:[#allocation8 + $0xad8] sm:$0xff] }
 0x244   :  { %v2757_v15 = vpack.c.bf16 %v1630_v57, %v1624_v53  ;;  %v1984_v53 = vld [vmem:[#allocation11 + $0x198] sm:$0xff] }
 0x245   :  { %2664 = vmatpush1.bf16.msra.mxu1 %v2663_v4  ;;  %v2705_v4 = vpack.c.bf16 %v1662_v62, %v1656_v41  ;;  %v2793_v62 = vpack.c.bf16 %v1960_v17, %v1959_v49  ;;  %v1965_v49 = vld [vmem:[#allocation11 + $0x100] sm:$0xff]  ;;  %v1966_v17 = vld [vmem:[#allocation11 + $0x108] sm:$0xff] }
 0x246   :  { %2666 = vmatprep.subr.bf16.mxu1 %v2665_v10  ;;  %v1661_v10 = vld [vmem:[#allocation8 + $0xbd0] sm:$0xff] }
 0x247   :  { %v2707_v30 = vpack.c.bf16 %v1661_v10, %v1655_v2  ;;  %v1944_v2 = vld [vmem:[#allocation11 + $0x58] sm:$0xff]  ;;  %v1961_v10 = vld [vmem:[#allocation11 + $0xe0] sm:$0xff] }
 0x249   :  { %2668 = vmatpush1.bf16.msra.mxu1 %v2667_v18  ;;  %v1933_v18 = vld [vmem:[#allocation11] sm:$0xff] }
 0x24a   :  { %2670 = vmatprep.subr.bf16.mxu1 %v2669_v60  ;;  %v2773_v60 = vpack.c.bf16 %v1950_v5, %v1949_v14  ;;  %v1623_v14 = vld [vmem:[#allocation8 + $0xaa0] sm:$0xff]  ;;  %v1629_v5 = vld [vmem:[#allocation8 + $0xad0] sm:$0xff] }
 0x24c   :  { %2774 = vmatprep.subr.bf16.mxu0 %v2773_v60  ;;  %v1642_v60 = vld [vmem:[#allocation8 + $0xb38] sm:$0xff] }
 0x24d   :  { %2672 = vmatpush1.bf16.msra.mxu1 %v2671_v20  ;;  %v2775_v20 = vpack.c.bf16 %v1934_v31, %v1933_v18  ;;  %v1636_v18 = vld [vmem:[#allocation8 + $0xb08] sm:$0xff] }
 0x24e   :  { %2674 = vmatprep.subr.bf16.mxu1 %v2673_v9  ;;  %v2777_v9 = vpack.c.bf16 %v1952_v46, %v1951_v50  ;;  %v2797_v50 = vpack.c.bf16 %v1962_v8, %v1961_v10  ;;  %v1945_v46 = vld [vmem:[#allocation11 + $0x60] sm:$0xff] }
 0x24f   :  { %2776 = vmatpush3.bf16.msra.mxu0 %v2775_v20  ;;  %v2759_v20 = vpack.c.bf16 %v1629_v5, %v1623_v14  ;;  %v1985_v8 = vld [vmem:[#allocation11 + $0x1a0] sm:$0xff] }
 0x250   :  { %2778 = vmatprep.subr.bf16.mxu0 %v2777_v9  ;;  %v2761_v9 = vpack.c.bf16 %v1642_v60, %v1636_v18  ;;  %v1969_v18 = vld [vmem:[#allocation11 + $0x120] sm:$0xff]  ;;  %v1970_v60 = vld [vmem:[#allocation11 + $0x128] sm:$0xff] }
 0x251   :  { %2676 = vmatpush1.bf16.msra.mxu1 %v2675_v16  ;;  %v1575_v16 = vld [vmem:[#allocation8 + $0x920] sm:$0xff] }
 0x252   :  { %2678 = vmatprep.subr.bf16.mxu1 %v2677_v7  ;;  %v1581_v7 = vld [vmem:[#allocation8 + $0x950] sm:$0xff] }
 0x253   :  { %v2743_v24 = vpack.c.bf16 %v1581_v7, %v1575_v16  ;;  %2780 = vmatpush3.bf16.msra.mxu0 %v2779_v19  ;;  %v2763_v7 = vpack.c.bf16 %v1641_v58, %v1635_v26  ;;  %v1660_v19 = vld [vmem:[#allocation8 + $0xbc8] sm:$0xff] }
 0x254   :  { %1559 = vmatmul.mubr.f32.vlgmr.msra.gmra.mrb[2].mxu1 %v3574_v38  ;;  %v2691_v38 = vpack.c.bf16 %v1613_v40, %v1607_v54  ;;  %v1940_v54 = vld [vmem:[#allocation11 + $0x38] sm:$0xff]  ;;  %v1989_v26 = vld [vmem:[#allocation11 + $0x1c0] sm:$0xff]  ;;  %v1990_v58 = vld [vmem:[#allocation11 + $0x1c8] sm:$0xff] }
 0x255   :  { %2680 = vmatpush1.bf16.msra.mxu1 %v2679_v12  ;;  %1734 = vmatprep.mubr.f32.mxu1 %v3097_v55  ;;  %v2781_v12 = vpack.c.bf16 %v1954_v22, %v1953_v28  ;;  %v1648_v28 = vld [vmem:[#allocation8 + $0xb68] sm:$0xff] }
 0x256   :  { %2682 = vmatprep.subr.bf16.mxu1 %v2681_v34  ;;  %v1937_v34 = vld [vmem:[#allocation11 + $0x20] sm:$0xff] }
 0x257   :  { %v2783_v63 = vpack.c.bf16 %v1938_v42, %v1937_v34  ;;  %2782 = vmatprep.subr.bf16.mxu0 %v2781_v12  ;;  %v1666_v12 = vld [vmem:[#allocation8 + $0xbf8] sm:$0xff] }
 0x258   :  { %v2769_v42 = vpack.c.bf16 %v1666_v12, %v1660_v19  ;;  %v1975_v12 = vld [vmem:[#allocation11 + $0x150] sm:$0xff] }
 0x259   :  { %2684 = vmatpush1.bf16.msra.mxu1 %v2683_v11  ;;  %v2745_v11 = vpack.c.bf16 %v1594_v21, %v1588_v48  ;;  %2784 = vmatpush3.bf16.msra.mxu0 %v2783_v63  ;;  %v1647_v48 = vld [vmem:[#allocation8 + $0xb60] sm:$0xff]  ;;  %v1653_v21 = vld [vmem:[#allocation8 + $0xb90] sm:$0xff] }
 0x25a   :  { %2686 = vmatprep.subr.bf16.mxu1 %v2685_v27  ;;  %v1587_v27 = vld [vmem:[#allocation8 + $0x980] sm:$0xff]  ;;  %v2767_v34 = vpack.c.bf16 %v1653_v21, %v1647_v48 }
 0x25b   :  { %v2747_v40 = vpack.c.bf16 %v1593_v25, %v1587_v27  ;;  %v1964_v27 = vld [vmem:[#allocation11 + $0xf8] sm:$0xff] }
 0x25c   :  { %v1992_v48 = vld [vmem:[#allocation11 + $0x1d8] sm:$0xff] }
 0x25d   :  { %2688 = vmatpush1.bf16.msra.mxu1 %v2687_v29  ;;  %v2785_v29 = vpack.c.bf16 %v1956_v39, %v1955_v13  ;;  %v1665_v13 = vld [vmem:[#allocation8 + $0xbf0] sm:$0xff] }
 0x25e   :  { %2690 = vmatprep.subr.bf16.mxu1 %v2689_v0  ;;  %v1939_v0 = vld [vmem:[#allocation11 + $0x30] sm:$0xff] }
 0x25f   :  { %v2787_v1 = vpack.c.bf16 %v1940_v54, %v1939_v0  ;;  %2786 = vmatprep.subr.bf16.mxu0 %v2785_v29  ;;  %v1981_v29 = vld [vmem:[#allocation11 + $0x180] sm:$0xff]  ;;  %v1982_v0 = vld [vmem:[#allocation11 + $0x188] sm:$0xff] }
 0x260   :  { %v2805_v54 = vpack.c.bf16 %v1982_v0, %v1981_v29 }
 0x261   :  { %2692 = vmatpush1.bf16.msra.mxu1 %v2691_v38  ;;  %v2749_v38 = vpack.c.bf16 %v1606_v37, %v1600_v56  ;;  %2788 = vmatpush3.bf16.msra.mxu0 %v2787_v1  ;;  %v1947_v56 = vld [vmem:[#allocation11 + $0x70] sm:$0xff]  ;;  %v1948_v37 = vld [vmem:[#allocation11 + $0x78] sm:$0xff] }
 0x262   :  { %2694 = vmatprep.subr.bf16.mxu1 %v2693_v3  ;;  %v1599_v3 = vld [vmem:[#allocation8 + $0x9e0] sm:$0xff]  ;;  %v2803_v63 = vpack.c.bf16 %v1948_v37, %v1947_v56  ;;  %v1995_v37 = vld [vmem:[#allocation11 + $0x1f0] sm:$0xff] }
 0x263   :  { %v2751_v23 = vpack.c.bf16 %v1605_v6, %v1599_v3 }
 0x265   :  { %2696 = vmatpush1.bf16.msra.mxu1 %v2695_v43  ;;  %v2789_v43 = vpack.c.bf16 %v1958_v45, %v1957_v51  ;;  %v1891_v45 = vlaneseq }
 0x266   :  { %2698 = vmatprep.subr.bf16.mxu1 %v2697_v61  ;;  %v1941_v61 = vld [vmem:[#allocation11 + $0x40] sm:$0xff] }
 0x267   :  { %v2791_v41 = vpack.c.bf16 %v1942_v47, %v1941_v61  ;;  %2790 = vmatprep.subr.bf16.mxu0 %v2789_v43 }
 0x269   :  { %2700 = vmatpush1.bf16.msra.mxu1 %v2699_v35  ;;  %v1611_v35 = vld [vmem:[#allocation8 + $0xa40] sm:$0xff]  ;;  %2792 = vmatpush3.bf16.msra.mxu0 %v2791_v41  ;;  %v2807_v41 = vpack.c.bf16 %v1966_v17, %v1965_v49  ;;  %v1998_v49 = vld [vmem:[#allocation11 + $0x208] sm:$0xff] }
 0x26a   :  { %2702 = vmatprep.subr.bf16.mxu1 %v2701_v33  ;;  %v1617_v33 = vld [vmem:[#allocation8 + $0xa70] sm:$0xff]  ;;  %2794 = vmatprep.subr.bf16.mxu0 %v2793_v62 }
 0x26d   :  { %2704 = vmatpush1.bf16.msra.mxu1 %v2703_v59  ;;  %v1943_v59 = vld [vmem:[#allocation11 + $0x50] sm:$0xff] }
 0x26e   :  { %2706 = vmatprep.subr.bf16.mxu1 %v2705_v4  ;;  %v2755_v4 = vpack.c.bf16 %v1617_v33, %v1611_v35  ;;  %v2795_v31 = vpack.c.bf16 %v1944_v2, %v1943_v59  ;;  %v1983_v33 = vld [vmem:[#allocation11 + $0x190] sm:$0xff] }
 0x26f   :  { %v2809_v59 = vpack.c.bf16 %v1984_v53, %v1983_v33  ;;  %v1967_v2 = vld [vmem:[#allocation11 + $0x110] sm:$0xff] }
 0x270   :  { %2796 = vmatpush3.bf16.msra.mxu0 %v2795_v31  ;;  %v1987_v31 = vld [vmem:[#allocation11 + $0x1b0] sm:$0xff] }
 0x271   :  { %2708 = vmatpush1.bf16.msra.mxu1 %v2707_v30  ;;  %v1946_v30 = vld [vmem:[#allocation11 + $0x68] sm:$0xff]  ;;  %2798 = vmatprep.subr.bf16.mxu0 %v2797_v50  ;;  %v1988_v50 = vld [vmem:[#allocation11 + $0x1b8] sm:$0xff] }
 0x272   :  { %2742 = vmatprep.subr.bf16.mxu1 %v2741_v32  ;;  %v1654_v32 = vld [vmem:[#allocation8 + $0xb98] sm:$0xff]  ;;  %v2799_v16 = vpack.c.bf16 %v1946_v30, %v1945_v46  ;;  %v2815_v46 = vpack.c.bf16 %v1970_v60, %v1969_v18  ;;  %v2817_v30 = vpack.c.bf16 %v1988_v50, %v1987_v31 }
 0x273   :  { %v2765_v22 = vpack.c.bf16 %v1654_v32, %v1648_v28  ;;  %v2821_v32 = vpack.c.bf16 %v1990_v58, %v1989_v26  ;;  %v2003_v31 = vld [vmem:[#allocation11 + $0x230] sm:$0xff]  ;;  %v2004_v50 = vld [vmem:[#allocation11 + $0x238] sm:$0xff]  ;;  %v2005_v26 = vld [vmem:[#allocation11 + $0x240] sm:$0xff] }
 0x274   :  { %1735 = vmatmul.mubr.f32.vlgmr.msra.gmra.mrb[0].mxu1 %v3581_v44  ;;  %2800 = vmatpush3.bf16.msra.mxu0 %v2799_v16  ;;  %v1973_v16 = vld [vmem:[#allocation11 + $0x140] sm:$0xff]  ;;  %v2006_v58 = vld [vmem:[#allocation11 + $0x248] sm:$0xff] }
 0x275   :  { %2744 = vmatpush1.bf16.msra.mxu1 %v2743_v24  ;;  %1876 = vmatprep.mubr.f32.mxu1 %v3097_v55  ;;  %v2753_v55 = vpack.c.bf16 %v1618_v52, %v1612_v36  ;;  %v1659_v24 = vld [vmem:[#allocation8 + $0xbc0] sm:$0xff] }
 0x276   :  { %2746 = vmatprep.subr.bf16.mxu1 %v2745_v11  ;;  %v2771_v39 = vpack.c.bf16 %v1665_v13, %v1659_v24  ;;  %v1963_v11 = vld [vmem:[#allocation11 + $0xf0] sm:$0xff]  ;;  %v3600_v36 = vld [vmem:[#allocation10] sm:$0x3f]  ;;  %v1994_v24 = vld [vmem:[#allocation11 + $0x1e8] sm:$0xff] }
 0x277   :  { %v2801_v25 = vpack.c.bf16 %v1964_v27, %v1963_v11  ;;  %v1977_v27 = vld [vmem:[#allocation11 + $0x160] sm:$0xff] }
 0x279   :  { %2748 = vmatpush1.bf16.msra.mxu1 %v2747_v40  ;;  %2802 = vmatprep.subr.bf16.mxu0 %v2801_v25  ;;  %v1978_v25 = vld [vmem:[#allocation11 + $0x168] sm:$0xff] }
 0x27a   :  { %2750 = vmatprep.subr.bf16.mxu1 %v2749_v38  ;;  %2804 = vmatpush3.bf16.msra.mxu0 %v2803_v63  ;;  %v3595_v38 = vshrl.u32 %v1891_v45, 7  ;;  %v1996_v63 = vld [vmem:[#allocation11 + $0x1f8] sm:$0xff]  ;;  %v2831_v29 = vpack.c.bf16 %v1978_v25, %v1977_v27 }
 0x27b   :  { %2806 = vmatprep.subr.bf16.mxu0 %v2805_v54  ;;  %v2833_v54 = vpack.c.bf16 %v1996_v63, %v1995_v37  ;;  %v1980_v45 = vld [vmem:[#allocation11 + $0x178] sm:$0xff]  ;;  %v2011_v37 = vld [vmem:[#allocation11 + $0x270] sm:$0xff] }
 0x27c   :  { %v1905_v3 = vsub.s32 3, %v3595_v38  ;;  %v1897_v6 = vsub.s32 1, %v3595_v38  ;;  %v1913_v56 = vsub.s32 5, %v3595_v38  ;;  %v2012_v63 = vld [vmem:[#allocation11 + $0x278] sm:$0xff] }
 0x27d   :  { %2752 = vmatpush1.bf16.msra.mxu1 %v2751_v23 }
 0x27e   :  { %2754 = vmatprep.subr.bf16.mxu1 %v2753_v55  ;;  %v1906_v1 = vrot.slane %v3600_v36, %v1905_v3  ;;  %v1898_v43 = vrot.slane %v3600_v36, %v1897_v6  ;;  %v2013_v3 = vld [vmem:[#allocation11 + $0x280] sm:$0xff]  ;;  %v2014_v6 = vld [vmem:[#allocation11 + $0x288] sm:$0xff] }
 0x281   :  { %2756 = vmatpush1.bf16.msra.mxu1 %v2755_v4  ;;  %v1968_v4 = vld [vmem:[#allocation11 + $0x118] sm:$0xff] }
 0x282   :  { %2758 = vmatprep.subr.bf16.mxu1 %v2757_v15  ;;  %v1986_v15 = vld [vmem:[#allocation11 + $0x1a8] sm:$0xff]  ;;  %v2811_v14 = vpack.c.bf16 %v1968_v4, %v1967_v2  ;;  %v2017_v2 = vld [vmem:[#allocation11 + $0x2a0] sm:$0xff] }
 0x283   :  { %v2813_v5 = vpack.c.bf16 %v1986_v15, %v1985_v8  ;;  %v2018_v4 = vld [vmem:[#allocation11 + $0x2a8] sm:$0xff]  ;;  %v2001_v8 = vld [vmem:[#allocation11 + $0x220] sm:$0xff] }
 0x284   :  { %v2002_v15 = vld [vmem:[#allocation11 + $0x228] sm:$0xff] }
 0x285   :  { %2760 = vmatpush1.bf16.msra.mxu1 %v2759_v20  ;;  %v1971_v20 = vld [vmem:[#allocation11 + $0x130] sm:$0xff]  ;;  %v2847_v18 = vpack.c.bf16 %v2002_v15, %v2001_v8 }
 0x286   :  { %2762 = vmatprep.subr.bf16.mxu1 %v2761_v9  ;;  %v1972_v9 = vld [vmem:[#allocation11 + $0x138] sm:$0xff] }
 0x287   :  { %v2819_v28 = vpack.c.bf16 %v1972_v9, %v1971_v20  ;;  %v2851_v20 = vpack.c.bf16 %v2004_v50, %v2003_v31 }
 0x289   :  { %2764 = vmatpush1.bf16.msra.mxu1 %v2763_v7  ;;  %v1974_v7 = vld [vmem:[#allocation11 + $0x148] sm:$0xff] }
 0x28a   :  { %2766 = vmatprep.subr.bf16.mxu1 %v2765_v22  ;;  %v1991_v22 = vld [vmem:[#allocation11 + $0x1d0] sm:$0xff]  ;;  %v2823_v21 = vpack.c.bf16 %v1974_v7, %v1973_v16  ;;  %v2855_v16 = vpack.c.bf16 %v2006_v58, %v2005_v26 }
 0x28b   :  { %v2825_v19 = vpack.c.bf16 %v1992_v48, %v1991_v22  ;;  %v2007_v22 = vld [vmem:[#allocation11 + $0x250] sm:$0xff]  ;;  %v2008_v48 = vld [vmem:[#allocation11 + $0x258] sm:$0xff] }
 0x28d   :  { %2768 = vmatpush1.bf16.msra.mxu1 %v2767_v34  ;;  %v1976_v34 = vld [vmem:[#allocation11 + $0x158] sm:$0xff] }
 0x28e   :  { %2770 = vmatprep.subr.bf16.mxu1 %v2769_v42  ;;  %v1993_v42 = vld [vmem:[#allocation11 + $0x1e0] sm:$0xff]  ;;  %v2827_v13 = vpack.c.bf16 %v1976_v34, %v1975_v12  ;;  %v2859_v12 = vpack.c.bf16 %v2008_v48, %v2007_v22  ;;  %v1909_v34 = vsub.s32 4, %v3595_v38 }
 0x28f   :  { %v2829_v11 = vpack.c.bf16 %v1994_v24, %v1993_v42  ;;  %v2009_v24 = vld [vmem:[#allocation11 + $0x260] sm:$0xff] }
 0x290   :  { %v1910_v25 = vrot.slane %v3600_v36, %v1909_v34 }
 0x291   :  { %2772 = vmatpush1.bf16.msra.mxu1 %v2771_v39  ;;  %v1901_v39 = vsub.s32 2, %v3595_v38 }
 0x293   :  { %v1902_v0 = vrot.slane %v3600_v36, %v1901_v39  ;;  %v2027_v39 = vld [vmem:[#allocation11 + $0x2f0] sm:$0xff] }
 0x294   :  { %1877 = vmatmul.mubr.f32.vlgmr.msra.gmra.mrb[2].mxu1 %v3581_v44  ;;  %v1893_v44 = vsub.s32 0, %v3595_v38 }
 0x296   :  { %v1894_v52 = vrot.slane %v3600_v36, %v1893_v44  ;;  %v1914_v44 = vrot.slane %v3600_v36, %v1913_v56 }
 0x2e7   :  { %v3593_v40 = vpop.f32.mrb[2].mxu0 }
 0x2e8   :  { %v1809_v51 = vpop.f32.mrb[3].mxu0 }
 0x2e9   :  { %v1924_v55 = vadd.f32 %v1906_v1, %v1809_v51  ;;  %v1979_v51 = vld [vmem:[#allocation11 + $0x170] sm:$0xff] }
 0x2ea   :  { %v2835_v1 = vpack.c.bf16 %v1980_v45, %v1979_v51 }
 0x2eb   :  { %v1930_v10 = vmax.f32 %v1924_v55, 0.0  ;;  %v2015_v55 = vld [vmem:[#allocation11 + $0x290] sm:$0xff] }
 0x347   :  { %v1736_v61 = vpop.f32.mrb[0].mxu1 }
 0x348   :  { %v1921_v47 = vadd.f32 %v1894_v52, %v1736_v61  ;;  %v1738_v23 = vpop.f32.mrb[1].mxu1 }
 0x349   :  { %v1922_v35 = vadd.f32 %v1898_v43, %v1738_v23  ;;  %v1923_v43 = vadd.f32 %v1902_v0, %v3593_v40  ;;  %v1997_v23 = vld [vmem:[#allocation11 + $0x200] sm:$0xff] }
 0x34a   :  { %v1927_v62 = vmax.f32 %v1921_v47, 0.0  ;;  %v2837_v47 = vpack.c.bf16 %v2014_v6, %v2013_v3  ;;  %v2839_v53 = vpack.c.bf16 %v1998_v49, %v1997_v23 }
 0x34b   :  { %v1928_v57 = vmax.f32 %v1922_v35, 0.0  ;;  %v2016_v35 = vld [vmem:[#allocation11 + $0x298] sm:$0xff] }
 0x34d   :  { %2100 = vmatprep.mubr.f32.mxu0 %v1928_v57  ;;  %v1929_v57 = vmax.f32 %v1923_v43, 0.0 }
 0x34e   :  { %2101 = vmatmul.mubr.f32.vlgmr.msra.gmra.mrb[4].mxu0 %v1927_v62  ;;  %v1999_v62 = vld [vmem:[#allocation11 + $0x210] sm:$0xff] }
 0x34f   :  { %2808 = vmatpush3.bf16.msra.mxu0 %v2807_v41  ;;  %2170 = vmatprep.mubr.f32.mxu0 %v1930_v10  ;;  %v2841_v41 = vpack.c.bf16 %v2016_v35, %v2015_v55  ;;  %v2845_v10 = vpack.c.bf16 %v2018_v4, %v2017_v2 }
 0x350   :  { %2810 = vmatprep.subr.bf16.mxu0 %v2809_v59  ;;  %v2000_v59 = vld [vmem:[#allocation11 + $0x218] sm:$0xff] }
 0x351   :  { %v2843_v40 = vpack.c.bf16 %v2000_v59, %v1999_v62 }
 0x353   :  { %2812 = vmatpush3.bf16.msra.mxu0 %v2811_v14  ;;  %v2019_v14 = vld [vmem:[#allocation11 + $0x2b0] sm:$0xff] }
 0x354   :  { %2814 = vmatprep.subr.bf16.mxu0 %v2813_v5  ;;  %v2020_v5 = vld [vmem:[#allocation11 + $0x2b8] sm:$0xff] }
 0x355   :  { %v2849_v60 = vpack.c.bf16 %v2020_v5, %v2019_v14 }
 0x357   :  { %2816 = vmatpush3.bf16.msra.mxu0 %v2815_v46  ;;  %v2021_v46 = vld [vmem:[#allocation11 + $0x2c0] sm:$0xff] }
 0x358   :  { %2818 = vmatprep.subr.bf16.mxu0 %v2817_v30  ;;  %v2022_v30 = vld [vmem:[#allocation11 + $0x2c8] sm:$0xff] }
 0x359   :  { %v2853_v9 = vpack.c.bf16 %v2022_v30, %v2021_v46 }
 0x35b   :  { %2820 = vmatpush3.bf16.msra.mxu0 %v2819_v28  ;;  %v2023_v28 = vld [vmem:[#allocation11 + $0x2d0] sm:$0xff] }
 0x35c   :  { %2822 = vmatprep.subr.bf16.mxu0 %v2821_v32  ;;  %v2024_v32 = vld [vmem:[#allocation11 + $0x2d8] sm:$0xff] }
 0x35d   :  { %v2857_v7 = vpack.c.bf16 %v2024_v32, %v2023_v28 }
 0x35f   :  { %2824 = vmatpush3.bf16.msra.mxu0 %v2823_v21  ;;  %v2025_v21 = vld [vmem:[#allocation11 + $0x2e0] sm:$0xff] }
 0x360   :  { %2826 = vmatprep.subr.bf16.mxu0 %v2825_v19  ;;  %v2026_v19 = vld [vmem:[#allocation11 + $0x2e8] sm:$0xff] }
 0x361   :  { %v2861_v42 = vpack.c.bf16 %v2026_v19, %v2025_v21 }
 0x363   :  { %2828 = vmatpush3.bf16.msra.mxu0 %v2827_v13  ;;  %v2010_v13 = vld [vmem:[#allocation11 + $0x268] sm:$0xff] }
 0x364   :  { %2830 = vmatprep.subr.bf16.mxu0 %v2829_v11  ;;  %v2028_v11 = vld [vmem:[#allocation11 + $0x2f8] sm:$0xff]  ;;  %v2863_v27 = vpack.c.bf16 %v2010_v13, %v2009_v24 }
 0x365   :  { %v2865_v56 = vpack.c.bf16 %v2028_v11, %v2027_v39 }
 0x367   :  { %2832 = vmatpush3.bf16.msra.mxu0 %v2831_v29  ;;  %v3609_v52 = vpop.f32.mrb[2].mxu1  ;;  %v2867_v29 = vpack.c.bf16 %v2012_v63, %v2011_v37 }
 0x368   :  { %v1880_v61 = vpop.f32.mrb[3].mxu1  ;;  %2834 = vmatprep.subr.bf16.mxu0 %v2833_v54  ;;  %v1925_v0 = vadd.f32 %v1910_v25, %v3609_v52 }
 0x369   :  { %v1926_v17 = vadd.f32 %v1914_v44, %v1880_v61  ;;  %v2268_v44 = vld [vmem:[#allocation13] ss:$0 sm:$0xff] }
 0x36a   :  { %v1931_v38 = vmax.f32 %v1925_v0, 0.0 }
 0x36b   :  { %v1932_v33 = vmax.f32 %v1926_v17, 0.0  ;;  %2836 = vmatpush3.bf16.msra.mxu0 %v2835_v1 }
 0x36c   :  { %2838 = vmatprep.subr.bf16.mxu0 %v2837_v47 }
 0x36e   :  { %2171 = vmatmul.mubr.f32.vlgmr.msra.gmra.mrb[6].mxu0 %v1929_v57 }
 0x36f   :  { %2840 = vmatpush3.bf16.msra.mxu0 %v2839_v53  ;;  %2240 = vmatprep.mubr.f32.mxu0 %v1932_v33 }
 0x370   :  { %2842 = vmatprep.subr.bf16.mxu0 %v2841_v41 }
 0x373   :  { %2844 = vmatpush3.bf16.msra.mxu0 %v2843_v40 }
 0x374   :  { %2846 = vmatprep.subr.bf16.mxu0 %v2845_v10 }
 0x377   :  { %2848 = vmatpush3.bf16.msra.mxu0 %v2847_v18 }
 0x378   :  { %2850 = vmatprep.subr.bf16.mxu0 %v2849_v60 }
 0x37b   :  { %2852 = vmatpush3.bf16.msra.mxu0 %v2851_v20 }
 0x37c   :  { %2854 = vmatprep.subr.bf16.mxu0 %v2853_v9 }
 0x37f   :  { %2856 = vmatpush3.bf16.msra.mxu0 %v2855_v16 }
 0x380   :  { %2858 = vmatprep.subr.bf16.mxu0 %v2857_v7 }
 0x383   :  { %2860 = vmatpush3.bf16.msra.mxu0 %v2859_v12 }
 0x384   :  { %2862 = vmatprep.subr.bf16.mxu0 %v2861_v42 }
 0x387   :  { %2864 = vmatpush3.bf16.msra.mxu0 %v2863_v27 }
 0x388   :  { %2866 = vmatprep.subr.bf16.mxu0 %v2865_v56 }
 0x38b   :  { %2868 = vmatpush3.bf16.msra.mxu0 %v2867_v29 }
 0x38e   :  { %2241 = vmatmul.mubr.f32.vlgmr.msra.gmra.mrb[8].mxu0 %v1931_v38 }
 0x421   :  { %v2305_v54 = vpop.f32.mrb[4].mxu0 }
 0x422   :  { %v2306_v51 = vpop.f32.mrb[5].mxu0 }
 0x423   :  { %v2307_v45 = vadd.f32 %v2306_v51, %v2305_v54 }
 0x425   :  { %v2103_v1 = vadd.f32 %v2307_v45, %v2268_v44 }
 0x441   :  { %v2340_v3 = vpop.f32.mrb[6].mxu0 }
 0x442   :  { %v2341_v6 = vpop.f32.mrb[7].mxu0 }
 0x443   :  { %v2342_v36 = vadd.f32 %v2341_v6, %v2340_v3 }
 0x445   :  { %v2173_v43 = vadd.f32 %v2342_v36, %v2103_v1 }
 0x461   :  { %v2375_v61 = vpop.f32.mrb[8].mxu0 }
 0x462   :  { %v2376_v47 = vpop.f32.mrb[9].mxu0 }
 0x463   :  { %v2377_v23 = vadd.f32 %v2376_v47, %v2375_v61 }
 0x465   :  { %v2243_v49 = vadd.f32 %v2377_v23, %v2173_v43 }
 0x467   :  { %2246 = vst [vmem:[#allocation14] sm:$0xf] %v2243_v49 }
 0x468   :  { %3065 = shalt.err (!%p3062_p4)
}
 0x469   :  { %s3066_s14 = scalar_lea.hbm %s3634_s7, 64 }
 0x46a   :  { %p3067_p5 = scmp.ne.s32.totalorder %s3634_s7, %s3066_s14  ;;  %p3070_p6 = scmp.lt.u32.totalorder %s3066_s14, %s3634_s7 }
 0x46c   :  { %p3072_p7 = pnand %p3070_p6, %p3067_p5 }
 0x46e   :  { %3075 = shalt.err (!%p3072_p7)
}
 0x46f   :  { %2256 = dma.vmem_to_hbm [thread:$0]  %s2254_s18, 64, %s3634_s7, [#allocation4]  }
 0x470   :  { %3084 = dma.done.wait [#allocation4], 64  }
 0x471   :  { %3085 = vsyncadd [#allocation4], 4294967232 }
 0x472   :  { %2260 = vsyncpa [#allocation3], 1 }
 0x473   :  { %2261 = vsyncpa [#allocation6], 1 }
 0x474   :  { %2262 = vsyncpa [#allocation9], 1 }
 0x475   :  { %2263 = vsyncpa [#allocation12], 1 }
 0x476   :  { %2264 = vsyncpa [#allocation4], 1 }

</bundles_post_ra>
